<compile_context>
chip_gen: v7x
topology: tpu7x:2x2x1
jax: 0.10.0
libtpu: 0.0.40
codegen_flags: <defaults>
</compile_context>

<pallas_src>
import functools
import math

import jax
import jax.numpy as jnp
import numpy as np
from jax.experimental import pallas as pl
from jax.experimental.pallas import tpu as pltpu

jax.config.update("jax_default_matmul_precision", "float32")

LN_EPS = 1e-5  # torch.nn.LayerNorm default


# ---------------------------------------------------------------------------
# Pallas kernel: full encoder layer for one block of batch elements
# ---------------------------------------------------------------------------
def encoder_layer_kernel(x_ref, mask_ref,
                         wqkv_ref, bqkv_ref, wo_ref, bo_ref,
                         w1_ref, b1_ref, w2_ref, b2_ref,
                         gamma_ref, beta_ref,
                         out_ref, *, num_heads):
    b_blk, S, D = x_ref.shape
    depth = D // num_heads
    dot_dtype = wqkv_ref.dtype                       # f32 (default) or bf16 MXU operands
    use_approx_recip = (wqkv_ref.dtype == jnp.float32)

    x = x_ref[...]                                   # (b_blk, S, D) f32
    x2d = x.reshape(b_blk * S, D)                    # fold batch into the matmul rows

    # --- fused QKV projection (1/sqrt(depth) already folded into the Q slice) ---
    qkv = jnp.dot(x2d.astype(dot_dtype), wqkv_ref[...],
                  preferred_element_type=jnp.float32) + bqkv_ref[0]   # (b*S, 3D) f32
    qkv3 = qkv.reshape(b_blk, S, 3 * D)

    # Hoisted: a single mask broadcast shared by every head.
    mask_b = jnp.broadcast_to(mask_ref[...], (b_blk, S, S))           # already * -1e9

    # --- per-head attention with W_o folded into the loop: no VMEM scratch
    #     slab, no narrow masked stores, head outputs stay in vregs. ---
    att = None
    for h in range(num_heads):                       # static unroll; num_heads small
        qh = qkv3[:, :, h * depth:(h + 1) * depth]                    # (b, S, depth)
        kh = qkv3[:, :, D + h * depth:D + (h + 1) * depth]
        vh = qkv3[:, :, 2 * D + h * depth:2 * D + (h + 1) * depth]

        s = jnp.einsum("bqd,bkd->bqk", qh.astype(dot_dtype), kh.astype(dot_dtype),
                       preferred_element_type=jnp.float32)            # (b, S, S)
        s = s + mask_b
        # numerically-stable softmax (== torch.nn.Softmax(dim=-1))
        s = s - jnp.max(s, axis=-1, keepdims=True)
        p = jnp.exp(s)
        denom = jnp.sum(p, axis=-1, keepdims=True)
        if use_approx_recip:
            p = p * pl.reciprocal(denom, approx=True)                 # EUP slot
        else:
            p = p / denom                                             # exact when bf16

        ctxh = jnp.einsum("bqk,bkd->bqd", p.astype(dot_dtype), vh.astype(dot_dtype),
                          preferred_element_type=jnp.float32)         # (b, S, depth)
        # Fold the output projection: (b*S, depth) @ (depth, D), lane-dense accumulate.
        contrib = jnp.dot(ctxh.reshape(b_blk * S, depth).astype(dot_dtype),
                          wo_ref[h], preferred_element_type=jnp.float32)
        att = contrib if att is None else att + contrib
    att = att + bo_ref[0]                                             # (b*S, D)

    def layer_norm(h, idx):
        mu = jnp.mean(h, axis=-1, keepdims=True)
        var = jnp.mean(jnp.square(h - mu), axis=-1, keepdims=True)
        return (h - mu) * jax.lax.rsqrt(var + LN_EPS) * gamma_ref[idx] + beta_ref[idx]

    # TODO(synk): nn.Dropout layers are treated as identity (eval-mode semantics).
    a1 = layer_norm(x2d + att, 0)

    # --- position-wise FFN on the folded (b*S, D) slab ---
    h1 = jnp.dot(a1.astype(dot_dtype), w1_ref[...],
                 preferred_element_type=jnp.float32) + b1_ref[0]
    h1 = jnp.maximum(h1, 0.0)
    ffn = jnp.dot(h1.astype(dot_dtype), w2_ref[...],
                  preferred_element_type=jnp.float32) + b2_ref[0]

    out = layer_norm(a1 + ffn, 1)
    out_ref[...] = out.reshape(b_blk, S, D).astype(out_ref.dtype)


# ---------------------------------------------------------------------------
# Wrapper: constant-folds scale/mask, fuses QKV weights, sets up BlockSpecs
# ---------------------------------------------------------------------------
def encoder_layer(inputs, mask, params, num_heads, *, block_b=None, use_bf16=False):
    B, S, D = inputs.shape
    if block_b is None:
        # Whole batch per grid step (tiny shapes -> folded (B*S, D) matmuls).
        # On v7x pass block_b = B // 2 for >=2 parallel steps (megacore).
        block_b = B
    assert B % block_b == 0
    depth = D // num_heads
    scale = 1.0 / math.sqrt(depth)

    dot_dtype = jnp.bfloat16 if use_bf16 else jnp.float32

    # Fused QKV weight (in, 3*out); 1/sqrt(depth) folded into the Q part.
    wqkv = jnp.concatenate([params["wq"] * scale, params["wk"], params["wv"]],
                           axis=1).astype(dot_dtype)                       # (D, 3D)
    bqkv = jnp.concatenate([params["bq"] * scale, params["bk"], params["bv"]]
                           )[None, :].astype(jnp.float32)                  # (1, 3D)
    # W_o presented per-head so the kernel indexes wo_ref[h] (leading-axis load).
    wo = params["wo"].reshape(num_heads, depth, D).astype(dot_dtype)       # (H, depth, D)
    bo = params["bo"][None, :].astype(jnp.float32)
    w1 = params["w1"].astype(dot_dtype)
    b1 = params["b1"][None, :].astype(jnp.float32)
    w2 = params["w2"].astype(dot_dtype)
    b2 = params["b2"][None, :].astype(jnp.float32)
    gamma = jnp.stack([params["gamma1"], params["gamma2"]]).astype(jnp.float32)
    beta = jnp.stack([params["beta1"], params["beta2"]]).astype(jnp.float32)

    # Pre-scale the additive mask (1 = masked) by -1e9; pass as (B, 1, S).
    mask_scaled = (mask.reshape(B, 1, S) * jnp.float32(-1e9)).astype(jnp.float32)

    def full_spec(shape):
        n = len(shape)
        return pl.BlockSpec(shape, lambda b, _n=n: (0,) * _n)

    weights = [wqkv, bqkv, wo, bo, w1, b1, w2, b2, gamma, beta]

    in_specs = [
        pl.BlockSpec((block_b, S, D), lambda b: (b, 0, 0)),
        pl.BlockSpec((block_b, 1, S), lambda b: (b, 0, 0)),
    ] + [full_spec(w.shape) for w in weights]

    return pl.pallas_call(
        functools.partial(encoder_layer_kernel, num_heads=num_heads),
        out_shape=jax.ShapeDtypeStruct((B, S, D), jnp.float32),
        grid=(B // block_b,),
        in_specs=in_specs,
        out_specs=pl.BlockSpec((block_b, S, D), lambda b: (b, 0, 0)),
        compiler_params=pltpu.CompilerParams(dimension_semantics=("parallel",)),
    )(inputs, mask_scaled, *weights)


# ---------------------------------------------------------------------------
# Pure-JAX reference (PyTorch EncoderLayer semantics, eval mode)
# ---------------------------------------------------------------------------
def mha_ref(v, k, q, mask, p, num_heads):
    B, S, D = q.shape
    depth = D // num_heads
    qp = q @ p["wq"] + p["bq"]
    kp = k @ p["wk"] + p["bk"]
    vp = v @ p["wv"] + p["bv"]
    split = lambda t: t.reshape(B, -1, num_heads, depth).transpose(0, 2, 1, 3)
    qh, kh, vh = split(qp), split(kp), split(vp)
    scores = jnp.einsum("bhqd,bhkd->bhqk", qh, kh) / math.sqrt(depth)
    scores = scores + mask * (-1e9)
    prob = jax.nn.softmax(scores, axis=-1)
    o = jnp.einsum("bhqk,bhkd->bhqd", prob, vh)
    o = o.transpose(0, 2, 1, 3).reshape(B, -1, D)
    return o @ p["wo"] + p["bo"]


def ln_ref(h, g, b):
    mu = jnp.mean(h, axis=-1, keepdims=True)
    var = jnp.mean(jnp.square(h - mu), axis=-1, keepdims=True)
    return (h - mu) * jax.lax.rsqrt(var + LN_EPS) * g + b


def encoder_layer_ref(x, mask, p, num_heads):
    a1 = ln_ref(x + mha_ref(x, x, x, mask, p, num_heads), p["gamma1"], p["beta1"])
    h1 = jnp.maximum(a1 @ p["w1"] + p["b1"], 0.0)
    ffn = h1 @ p["w2"] + p["b2"]
    return ln_ref(a1 + ffn, p["gamma2"], p["beta2"])


# ---------------------------------------------------------------------------
# Main
# ---------------------------------------------------------------------------
if __name__ == "__main__":
    B, S, D, H, DFF = 2, 8, 32, 4, 64

    key = jax.random.PRNGKey(0)
    ks = jax.random.split(key, 20)

    def rnd(k, shape, scale=0.1):
        return (scale * jax.random.normal(k, shape)).astype(jnp.float32)

    # Linear weights stored pre-transposed to (in_features, out_features).
    params = {
        "wq": rnd(ks[0], (D, D)), "bq": rnd(ks[1], (D,)),
        "wk": rnd(ks[2], (D, D)), "bk": rnd(ks[3], (D,)),
        "wv": rnd(ks[4], (D, D)), "bv": rnd(ks[5], (D,)),
        "wo": rnd(ks[6], (D, D)), "bo": rnd(ks[7], (D,)),
        "w1": rnd(ks[8], (D, DFF)), "b1": rnd(ks[9], (DFF,)),
        "w2": rnd(ks[10], (DFF, D)), "b2": rnd(ks[11], (D,)),
        "gamma1": jnp.ones((D,), jnp.float32), "beta1": jnp.zeros((D,), jnp.float32),
        "gamma2": jnp.ones((D,), jnp.float32), "beta2": jnp.zeros((D,), jnp.float32),
    }

    inputs = rnd(ks[12], (B, S, D), scale=1.0)
    # padding mask (1 = masked): last two positions masked, shape (B, 1, 1, S)
    mask = jnp.zeros((B, 1, 1, S), jnp.float32).at[:, :, :, -2:].set(1.0)

    out = encoder_layer(inputs, mask, params, H, use_bf16=False)
    out = jax.block_until_ready(out)

    ref = encoder_layer_ref(inputs, mask, params, H)
    np.testing.assert_allclose(np.asarray(out), np.asarray(ref), rtol=2e-3, atol=2e-3)

    print("KERNEL_OK")
</pallas_src>

<mosaic_0001>
module attributes {stable_mosaic.version = 11 : i64} {
  func.func @encoder_layer_kernel(%arg0: i32, %arg1: memref<2x8x32xf32, #tpu.memory_space<vmem>>, %arg2: memref<2x1x8xf32, #tpu.memory_space<vmem>>, %arg3: memref<32x96xf32, #tpu.memory_space<vmem>>, %arg4: memref<1x96xf32, #tpu.memory_space<vmem>>, %arg5: memref<4x8x32xf32, #tpu.memory_space<vmem>>, %arg6: memref<1x32xf32, #tpu.memory_space<vmem>>, %arg7: memref<32x64xf32, #tpu.memory_space<vmem>>, %arg8: memref<1x64xf32, #tpu.memory_space<vmem>>, %arg9: memref<64x32xf32, #tpu.memory_space<vmem>>, %arg10: memref<1x32xf32, #tpu.memory_space<vmem>>, %arg11: memref<2x32xf32, #tpu.memory_space<vmem>>, %arg12: memref<2x32xf32, #tpu.memory_space<vmem>>, %arg13: memref<2x8x32xf32, #tpu.memory_space<vmem>>) attributes {dimension_semantics = [#tpu.dimension_semantics<parallel>], iteration_bounds = array<i64: 1>, scalar_prefetch = 0 : i64, scratch_operands = 0 : i64, tpu.core_type = #tpu.core_type<tc>, window_params = [{transform_indices = @transform_0, window_bounds = array<i64: 2, 8, 32>}, {transform_indices = @transform_1, window_bounds = array<i64: 2, 1, 8>}, {pipeline_mode = #tpu.pipeline_mode<synchronous>, transform_indices = @transform_2, window_bounds = array<i64: 32, 96>}, {pipeline_mode = #tpu.pipeline_mode<synchronous>, transform_indices = @transform_3, window_bounds = array<i64: 1, 96>}, {pipeline_mode = #tpu.pipeline_mode<synchronous>, transform_indices = @transform_4, window_bounds = array<i64: 4, 8, 32>}, {pipeline_mode = #tpu.pipeline_mode<synchronous>, transform_indices = @transform_5, window_bounds = array<i64: 1, 32>}, {pipeline_mode = #tpu.pipeline_mode<synchronous>, transform_indices = @transform_6, window_bounds = array<i64: 32, 64>}, {pipeline_mode = #tpu.pipeline_mode<synchronous>, transform_indices = @transform_7, window_bounds = array<i64: 1, 64>}, {pipeline_mode = #tpu.pipeline_mode<synchronous>, transform_indices = @transform_8, window_bounds = array<i64: 64, 32>}, {pipeline_mode = #tpu.pipeline_mode<synchronous>, transform_indices = @transform_9, window_bounds = array<i64: 1, 32>}, {pipeline_mode = #tpu.pipeline_mode<synchronous>, transform_indices = @transform_10, window_bounds = array<i64: 2, 32>}, {pipeline_mode = #tpu.pipeline_mode<synchronous>, transform_indices = @transform_11, window_bounds = array<i64: 2, 32>}, {transform_indices = @transform_12, window_bounds = array<i64: 2, 8, 32>}]} {
    %c0 = arith.constant 0 : index
    %c0_0 = arith.constant 0 : index
    %c0_1 = arith.constant 0 : index
    %0 = vector.load %arg1[%c0, %c0_0, %c0_1] : memref<2x8x32xf32, #tpu.memory_space<vmem>>, vector<2x8x32xf32>
    %1 = vector.shape_cast %0 : vector<2x8x32xf32> to vector<16x32xf32>
    %c0_2 = arith.constant 0 : index
    %c0_3 = arith.constant 0 : index
    %2 = vector.load %arg3[%c0_2, %c0_3] : memref<32x96xf32, #tpu.memory_space<vmem>>, vector<32x96xf32>
    %cst = arith.constant dense<0.000000e+00> : vector<16x96xf32>
    %3 = tpu.matmul %1, %2, %cst {dimension_numbers = #tpu.dot_dimension_numbers<[1], [0], [0], [1], [0, 0, 1, 1], [], []>, precision = #tpu.contract_precision<fp32>} : vector<16x32xf32>, vector<32x96xf32>, vector<16x96xf32> -> vector<16x96xf32>
    %c0_4 = arith.constant 0 : index
    %c0_5 = arith.constant 0 : index
    %4 = vector.load %arg4[%c0_4, %c0_5] : memref<1x96xf32, #tpu.memory_space<vmem>>, vector<1x96xf32>
    %5 = vector.shape_cast %4 : vector<1x96xf32> to vector<96xf32>
    %6 = vector.shape_cast %5 : vector<96xf32> to vector<1x96xf32>
    %7 = vector.broadcast %6 : vector<1x96xf32> to vector<16x96xf32>
    %8 = arith.addf %3, %7 : vector<16x96xf32>
    %9 = vector.shape_cast %8 : vector<16x96xf32> to vector<2x8x96xf32>
    %c0_6 = arith.constant 0 : index
    %c0_7 = arith.constant 0 : index
    %c0_8 = arith.constant 0 : index
    %10 = vector.load %arg2[%c0_6, %c0_7, %c0_8] : memref<2x1x8xf32, #tpu.memory_space<vmem>>, vector<2x1x8xf32>
    %11 = vector.shape_cast %10 : vector<2x1x8xf32> to vector<2x1x8xf32>
    %12 = vector.broadcast %11 : vector<2x1x8xf32> to vector<2x8x8xf32>
    %13 = vector.extract_strided_slice %9 {offsets = [0, 0, 0], sizes = [2, 8, 8], strides = [1, 1, 1]} : vector<2x8x96xf32> to vector<2x8x8xf32>
    %14 = vector.extract_strided_slice %9 {offsets = [0, 0, 32], sizes = [2, 8, 8], strides = [1, 1, 1]} : vector<2x8x96xf32> to vector<2x8x8xf32>
    %15 = vector.extract_strided_slice %9 {offsets = [0, 0, 64], sizes = [2, 8, 8], strides = [1, 1, 1]} : vector<2x8x96xf32> to vector<2x8x8xf32>
    "tpu.trace_start"() <{level = 10 : i32, message = "bqd,bkd->bqk"}> : () -> ()
    %cst_9 = arith.constant dense<0.000000e+00> : vector<2x8x8xf32>
    %16 = tpu.matmul %13, %14, %cst_9 {dimension_numbers = #tpu.dot_dimension_numbers<[2], [2], [1], [1], [0, 0, 0, 1, 1, 1], [0], [0]>, precision = #tpu.contract_precision<fp32>} : vector<2x8x8xf32>, vector<2x8x8xf32>, vector<2x8x8xf32> -> vector<2x8x8xf32>
    "tpu.trace_stop"() : () -> ()
    %17 = arith.addf %16, %12 : vector<2x8x8xf32>
    %cst_10 = arith.constant dense<0xFF800000> : vector<2x8xf32>
    %18 = vector.multi_reduction <maximumf>, %17, %cst_10 [2] : vector<2x8x8xf32> to vector<2x8xf32>
    %19 = vector.shape_cast %18 : vector<2x8xf32> to vector<2x8x1xf32>
    %20 = vector.broadcast %19 : vector<2x8x1xf32> to vector<2x8x8xf32>
    %21 = arith.subf %17, %20 : vector<2x8x8xf32>
    %22 = math.exp %21 : vector<2x8x8xf32>
    %cst_11 = arith.constant dense<0.000000e+00> : vector<2x8xf32>
    %23 = vector.multi_reduction <add>, %22, %cst_11 [2] : vector<2x8x8xf32> to vector<2x8xf32>
    %24 = vector.shape_cast %23 : vector<2x8xf32> to vector<2x8x1xf32>
    %25 = tpu.reciprocal %24 {approx = true} : vector<2x8x1xf32> -> vector<2x8x1xf32>
    %26 = vector.broadcast %25 : vector<2x8x1xf32> to vector<2x8x8xf32>
    %27 = arith.mulf %22, %26 : vector<2x8x8xf32>
    "tpu.trace_start"() <{level = 10 : i32, message = "bqk,bkd->bqd"}> : () -> ()
    %cst_12 = arith.constant dense<0.000000e+00> : vector<2x8x8xf32>
    %28 = tpu.matmul %27, %15, %cst_12 {dimension_numbers = #tpu.dot_dimension_numbers<[2], [1], [1], [2], [0, 0, 0, 1, 1, 2], [0], [0]>, precision = #tpu.contract_precision<fp32>} : vector<2x8x8xf32>, vector<2x8x8xf32>, vector<2x8x8xf32> -> vector<2x8x8xf32>
    "tpu.trace_stop"() : () -> ()
    %29 = vector.shape_cast %28 : vector<2x8x8xf32> to vector<16x8xf32>
    %c0_13 = arith.constant 0 : index
    %c0_14 = arith.constant 0 : index
    %c0_15 = arith.constant 0 : index
    %30 = vector.load %arg5[%c0_13, %c0_14, %c0_15] : memref<4x8x32xf32, #tpu.memory_space<vmem>>, vector<1x8x32xf32>
    %31 = vector.shape_cast %30 : vector<1x8x32xf32> to vector<8x32xf32>
    %cst_16 = arith.constant dense<0.000000e+00> : vector<16x32xf32>
    %32 = tpu.matmul %29, %31, %cst_16 {dimension_numbers = #tpu.dot_dimension_numbers<[1], [0], [0], [1], [0, 0, 1, 1], [], []>, precision = #tpu.contract_precision<fp32>} : vector<16x8xf32>, vector<8x32xf32>, vector<16x32xf32> -> vector<16x32xf32>
    %33 = vector.extract_strided_slice %9 {offsets = [0, 0, 8], sizes = [2, 8, 8], strides = [1, 1, 1]} : vector<2x8x96xf32> to vector<2x8x8xf32>
    %34 = vector.extract_strided_slice %9 {offsets = [0, 0, 40], sizes = [2, 8, 8], strides = [1, 1, 1]} : vector<2x8x96xf32> to vector<2x8x8xf32>
    %35 = vector.extract_strided_slice %9 {offsets = [0, 0, 72], sizes = [2, 8, 8], strides = [1, 1, 1]} : vector<2x8x96xf32> to vector<2x8x8xf32>
    "tpu.trace_start"() <{level = 10 : i32, message = "bqd,bkd->bqk"}> : () -> ()
    %cst_17 = arith.constant dense<0.000000e+00> : vector<2x8x8xf32>
    %36 = tpu.matmul %33, %34, %cst_17 {dimension_numbers = #tpu.dot_dimension_numbers<[2], [2], [1], [1], [0, 0, 0, 1, 1, 1], [0], [0]>, precision = #tpu.contract_precision<fp32>} : vector<2x8x8xf32>, vector<2x8x8xf32>, vector<2x8x8xf32> -> vector<2x8x8xf32>
    "tpu.trace_stop"() : () -> ()
    %37 = arith.addf %36, %12 : vector<2x8x8xf32>
    %cst_18 = arith.constant dense<0xFF800000> : vector<2x8xf32>
    %38 = vector.multi_reduction <maximumf>, %37, %cst_18 [2] : vector<2x8x8xf32> to vector<2x8xf32>
    %39 = vector.shape_cast %38 : vector<2x8xf32> to vector<2x8x1xf32>
    %40 = vector.broadcast %39 : vector<2x8x1xf32> to vector<2x8x8xf32>
    %41 = arith.subf %37, %40 : vector<2x8x8xf32>
    %42 = math.exp %41 : vector<2x8x8xf32>
    %cst_19 = arith.constant dense<0.000000e+00> : vector<2x8xf32>
    %43 = vector.multi_reduction <add>, %42, %cst_19 [2] : vector<2x8x8xf32> to vector<2x8xf32>
    %44 = vector.shape_cast %43 : vector<2x8xf32> to vector<2x8x1xf32>
    %45 = tpu.reciprocal %44 {approx = true} : vector<2x8x1xf32> -> vector<2x8x1xf32>
    %46 = vector.broadcast %45 : vector<2x8x1xf32> to vector<2x8x8xf32>
    %47 = arith.mulf %42, %46 : vector<2x8x8xf32>
    "tpu.trace_start"() <{level = 10 : i32, message = "bqk,bkd->bqd"}> : () -> ()
    %cst_20 = arith.constant dense<0.000000e+00> : vector<2x8x8xf32>
    %48 = tpu.matmul %47, %35, %cst_20 {dimension_numbers = #tpu.dot_dimension_numbers<[2], [1], [1], [2], [0, 0, 0, 1, 1, 2], [0], [0]>, precision = #tpu.contract_precision<fp32>} : vector<2x8x8xf32>, vector<2x8x8xf32>, vector<2x8x8xf32> -> vector<2x8x8xf32>
    "tpu.trace_stop"() : () -> ()
    %49 = vector.shape_cast %48 : vector<2x8x8xf32> to vector<16x8xf32>
    %c1 = arith.constant 1 : index
    %c0_21 = arith.constant 0 : index
    %c0_22 = arith.constant 0 : index
    %50 = vector.load %arg5[%c1, %c0_21, %c0_22] : memref<4x8x32xf32, #tpu.memory_space<vmem>>, vector<1x8x32xf32>
    %51 = vector.shape_cast %50 : vector<1x8x32xf32> to vector<8x32xf32>
    %cst_23 = arith.constant dense<0.000000e+00> : vector<16x32xf32>
    %52 = tpu.matmul %49, %51, %cst_23 {dimension_numbers = #tpu.dot_dimension_numbers<[1], [0], [0], [1], [0, 0, 1, 1], [], []>, precision = #tpu.contract_precision<fp32>} : vector<16x8xf32>, vector<8x32xf32>, vector<16x32xf32> -> vector<16x32xf32>
    %53 = arith.addf %32, %52 : vector<16x32xf32>
    %54 = vector.extract_strided_slice %9 {offsets = [0, 0, 16], sizes = [2, 8, 8], strides = [1, 1, 1]} : vector<2x8x96xf32> to vector<2x8x8xf32>
    %55 = vector.extract_strided_slice %9 {offsets = [0, 0, 48], sizes = [2, 8, 8], strides = [1, 1, 1]} : vector<2x8x96xf32> to vector<2x8x8xf32>
    %56 = vector.extract_strided_slice %9 {offsets = [0, 0, 80], sizes = [2, 8, 8], strides = [1, 1, 1]} : vector<2x8x96xf32> to vector<2x8x8xf32>
    "tpu.trace_start"() <{level = 10 : i32, message = "bqd,bkd->bqk"}> : () -> ()
    %cst_24 = arith.constant dense<0.000000e+00> : vector<2x8x8xf32>
    %57 = tpu.matmul %54, %55, %cst_24 {dimension_numbers = #tpu.dot_dimension_numbers<[2], [2], [1], [1], [0, 0, 0, 1, 1, 1], [0], [0]>, precision = #tpu.contract_precision<fp32>} : vector<2x8x8xf32>, vector<2x8x8xf32>, vector<2x8x8xf32> -> vector<2x8x8xf32>
    "tpu.trace_stop"() : () -> ()
    %58 = arith.addf %57, %12 : vector<2x8x8xf32>
    %cst_25 = arith.constant dense<0xFF800000> : vector<2x8xf32>
    %59 = vector.multi_reduction <maximumf>, %58, %cst_25 [2] : vector<2x8x8xf32> to vector<2x8xf32>
    %60 = vector.shape_cast %59 : vector<2x8xf32> to vector<2x8x1xf32>
    %61 = vector.broadcast %60 : vector<2x8x1xf32> to vector<2x8x8xf32>
    %62 = arith.subf %58, %61 : vector<2x8x8xf32>
    %63 = math.exp %62 : vector<2x8x8xf32>
    %cst_26 = arith.constant dense<0.000000e+00> : vector<2x8xf32>
    %64 = vector.multi_reduction <add>, %63, %cst_26 [2] : vector<2x8x8xf32> to vector<2x8xf32>
    %65 = vector.shape_cast %64 : vector<2x8xf32> to vector<2x8x1xf32>
    %66 = tpu.reciprocal %65 {approx = true} : vector<2x8x1xf32> -> vector<2x8x1xf32>
    %67 = vector.broadcast %66 : vector<2x8x1xf32> to vector<2x8x8xf32>
    %68 = arith.mulf %63, %67 : vector<2x8x8xf32>
    "tpu.trace_start"() <{level = 10 : i32, message = "bqk,bkd->bqd"}> : () -> ()
    %cst_27 = arith.constant dense<0.000000e+00> : vector<2x8x8xf32>
    %69 = tpu.matmul %68, %56, %cst_27 {dimension_numbers = #tpu.dot_dimension_numbers<[2], [1], [1], [2], [0, 0, 0, 1, 1, 2], [0], [0]>, precision = #tpu.contract_precision<fp32>} : vector<2x8x8xf32>, vector<2x8x8xf32>, vector<2x8x8xf32> -> vector<2x8x8xf32>
    "tpu.trace_stop"() : () -> ()
    %70 = vector.shape_cast %69 : vector<2x8x8xf32> to vector<16x8xf32>
    %c2 = arith.constant 2 : index
    %c0_28 = arith.constant 0 : index
    %c0_29 = arith.constant 0 : index
    %71 = vector.load %arg5[%c2, %c0_28, %c0_29] : memref<4x8x32xf32, #tpu.memory_space<vmem>>, vector<1x8x32xf32>
    %72 = vector.shape_cast %71 : vector<1x8x32xf32> to vector<8x32xf32>
    %cst_30 = arith.constant dense<0.000000e+00> : vector<16x32xf32>
    %73 = tpu.matmul %70, %72, %cst_30 {dimension_numbers = #tpu.dot_dimension_numbers<[1], [0], [0], [1], [0, 0, 1, 1], [], []>, precision = #tpu.contract_precision<fp32>} : vector<16x8xf32>, vector<8x32xf32>, vector<16x32xf32> -> vector<16x32xf32>
    %74 = arith.addf %53, %73 : vector<16x32xf32>
    %75 = vector.extract_strided_slice %9 {offsets = [0, 0, 24], sizes = [2, 8, 8], strides = [1, 1, 1]} : vector<2x8x96xf32> to vector<2x8x8xf32>
    %76 = vector.extract_strided_slice %9 {offsets = [0, 0, 56], sizes = [2, 8, 8], strides = [1, 1, 1]} : vector<2x8x96xf32> to vector<2x8x8xf32>
    %77 = vector.extract_strided_slice %9 {offsets = [0, 0, 88], sizes = [2, 8, 8], strides = [1, 1, 1]} : vector<2x8x96xf32> to vector<2x8x8xf32>
    "tpu.trace_start"() <{level = 10 : i32, message = "bqd,bkd->bqk"}> : () -> ()
    %cst_31 = arith.constant dense<0.000000e+00> : vector<2x8x8xf32>
    %78 = tpu.matmul %75, %76, %cst_31 {dimension_numbers = #tpu.dot_dimension_numbers<[2], [2], [1], [1], [0, 0, 0, 1, 1, 1], [0], [0]>, precision = #tpu.contract_precision<fp32>} : vector<2x8x8xf32>, vector<2x8x8xf32>, vector<2x8x8xf32> -> vector<2x8x8xf32>
    "tpu.trace_stop"() : () -> ()
    %79 = arith.addf %78, %12 : vector<2x8x8xf32>
    %cst_32 = arith.constant dense<0xFF800000> : vector<2x8xf32>
    %80 = vector.multi_reduction <maximumf>, %79, %cst_32 [2] : vector<2x8x8xf32> to vector<2x8xf32>
    %81 = vector.shape_cast %80 : vector<2x8xf32> to vector<2x8x1xf32>
    %82 = vector.broadcast %81 : vector<2x8x1xf32> to vector<2x8x8xf32>
    %83 = arith.subf %79, %82 : vector<2x8x8xf32>
    %84 = math.exp %83 : vector<2x8x8xf32>
    %cst_33 = arith.constant dense<0.000000e+00> : vector<2x8xf32>
    %85 = vector.multi_reduction <add>, %84, %cst_33 [2] : vector<2x8x8xf32> to vector<2x8xf32>
    %86 = vector.shape_cast %85 : vector<2x8xf32> to vector<2x8x1xf32>
    %87 = tpu.reciprocal %86 {approx = true} : vector<2x8x1xf32> -> vector<2x8x1xf32>
    %88 = vector.broadcast %87 : vector<2x8x1xf32> to vector<2x8x8xf32>
    %89 = arith.mulf %84, %88 : vector<2x8x8xf32>
    "tpu.trace_start"() <{level = 10 : i32, message = "bqk,bkd->bqd"}> : () -> ()
    %cst_34 = arith.constant dense<0.000000e+00> : vector<2x8x8xf32>
    %90 = tpu.matmul %89, %77, %cst_34 {dimension_numbers = #tpu.dot_dimension_numbers<[2], [1], [1], [2], [0, 0, 0, 1, 1, 2], [0], [0]>, precision = #tpu.contract_precision<fp32>} : vector<2x8x8xf32>, vector<2x8x8xf32>, vector<2x8x8xf32> -> vector<2x8x8xf32>
    "tpu.trace_stop"() : () -> ()
    %91 = vector.shape_cast %90 : vector<2x8x8xf32> to vector<16x8xf32>
    %c3 = arith.constant 3 : index
    %c0_35 = arith.constant 0 : index
    %c0_36 = arith.constant 0 : index
    %92 = vector.load %arg5[%c3, %c0_35, %c0_36] : memref<4x8x32xf32, #tpu.memory_space<vmem>>, vector<1x8x32xf32>
    %93 = vector.shape_cast %92 : vector<1x8x32xf32> to vector<8x32xf32>
    %cst_37 = arith.constant dense<0.000000e+00> : vector<16x32xf32>
    %94 = tpu.matmul %91, %93, %cst_37 {dimension_numbers = #tpu.dot_dimension_numbers<[1], [0], [0], [1], [0, 0, 1, 1], [], []>, precision = #tpu.contract_precision<fp32>} : vector<16x8xf32>, vector<8x32xf32>, vector<16x32xf32> -> vector<16x32xf32>
    %95 = arith.addf %74, %94 : vector<16x32xf32>
    %c0_38 = arith.constant 0 : index
    %c0_39 = arith.constant 0 : index
    %96 = vector.load %arg6[%c0_38, %c0_39] : memref<1x32xf32, #tpu.memory_space<vmem>>, vector<1x32xf32>
    %97 = vector.shape_cast %96 : vector<1x32xf32> to vector<32xf32>
    %98 = vector.shape_cast %97 : vector<32xf32> to vector<1x32xf32>
    %99 = vector.broadcast %98 : vector<1x32xf32> to vector<16x32xf32>
    %100 = arith.addf %95, %99 : vector<16x32xf32>
    %101 = arith.addf %1, %100 : vector<16x32xf32>
    %cst_40 = arith.constant dense<0.000000e+00> : vector<16xf32>
    %102 = vector.multi_reduction <add>, %101, %cst_40 [1] : vector<16x32xf32> to vector<16xf32>
    %103 = vector.shape_cast %102 : vector<16xf32> to vector<16x1xf32>
    %cst_41 = arith.constant 3.200000e+01 : f32
    %104 = vector.broadcast %cst_41 : f32 to vector<16x1xf32>
    %105 = arith.divf %103, %104 : vector<16x1xf32>
    %106 = vector.broadcast %105 : vector<16x1xf32> to vector<16x32xf32>
    %107 = arith.subf %101, %106 : vector<16x32xf32>
    %108 = arith.mulf %107, %107 : vector<16x32xf32>
    %cst_42 = arith.constant dense<0.000000e+00> : vector<16xf32>
    %109 = vector.multi_reduction <add>, %108, %cst_42 [1] : vector<16x32xf32> to vector<16xf32>
    %110 = vector.shape_cast %109 : vector<16xf32> to vector<16x1xf32>
    %cst_43 = arith.constant 3.200000e+01 : f32
    %111 = vector.broadcast %cst_43 : f32 to vector<16x1xf32>
    %112 = arith.divf %110, %111 : vector<16x1xf32>
    %113 = vector.broadcast %105 : vector<16x1xf32> to vector<16x32xf32>
    %114 = arith.subf %101, %113 : vector<16x32xf32>
    %cst_44 = arith.constant 9.99999974E-6 : f32
    %115 = vector.broadcast %cst_44 : f32 to vector<16x1xf32>
    %116 = arith.addf %112, %115 : vector<16x1xf32>
    %117 = math.rsqrt %116 : vector<16x1xf32>
    %118 = vector.broadcast %117 : vector<16x1xf32> to vector<16x32xf32>
    %119 = arith.mulf %114, %118 : vector<16x32xf32>
    %c0_45 = arith.constant 0 : index
    %c0_46 = arith.constant 0 : index
    %120 = vector.load %arg11[%c0_45, %c0_46] : memref<2x32xf32, #tpu.memory_space<vmem>>, vector<1x32xf32>
    %121 = vector.shape_cast %120 : vector<1x32xf32> to vector<32xf32>
    %122 = vector.shape_cast %121 : vector<32xf32> to vector<1x32xf32>
    %123 = vector.broadcast %122 : vector<1x32xf32> to vector<16x32xf32>
    %124 = arith.mulf %119, %123 : vector<16x32xf32>
    %c0_47 = arith.constant 0 : index
    %c0_48 = arith.constant 0 : index
    %125 = vector.load %arg12[%c0_47, %c0_48] : memref<2x32xf32, #tpu.memory_space<vmem>>, vector<1x32xf32>
    %126 = vector.shape_cast %125 : vector<1x32xf32> to vector<32xf32>
    %127 = vector.shape_cast %126 : vector<32xf32> to vector<1x32xf32>
    %128 = vector.broadcast %127 : vector<1x32xf32> to vector<16x32xf32>
    %129 = arith.addf %124, %128 : vector<16x32xf32>
    %c0_49 = arith.constant 0 : index
    %c0_50 = arith.constant 0 : index
    %130 = vector.load %arg7[%c0_49, %c0_50] : memref<32x64xf32, #tpu.memory_space<vmem>>, vector<32x64xf32>
    %cst_51 = arith.constant dense<0.000000e+00> : vector<16x64xf32>
    %131 = tpu.matmul %129, %130, %cst_51 {dimension_numbers = #tpu.dot_dimension_numbers<[1], [0], [0], [1], [0, 0, 1, 1], [], []>, precision = #tpu.contract_precision<fp32>} : vector<16x32xf32>, vector<32x64xf32>, vector<16x64xf32> -> vector<16x64xf32>
    %c0_52 = arith.constant 0 : index
    %c0_53 = arith.constant 0 : index
    %132 = vector.load %arg8[%c0_52, %c0_53] : memref<1x64xf32, #tpu.memory_space<vmem>>, vector<1x64xf32>
    %133 = vector.shape_cast %132 : vector<1x64xf32> to vector<64xf32>
    %134 = vector.shape_cast %133 : vector<64xf32> to vector<1x64xf32>
    %135 = vector.broadcast %134 : vector<1x64xf32> to vector<16x64xf32>
    %136 = arith.addf %131, %135 : vector<16x64xf32>
    %cst_54 = arith.constant 0.000000e+00 : f32
    %137 = vector.broadcast %cst_54 : f32 to vector<16x64xf32>
    %138 = arith.maximumf %136, %137 : vector<16x64xf32>
    %c0_55 = arith.constant 0 : index
    %c0_56 = arith.constant 0 : index
    %139 = vector.load %arg9[%c0_55, %c0_56] : memref<64x32xf32, #tpu.memory_space<vmem>>, vector<64x32xf32>
    %cst_57 = arith.constant dense<0.000000e+00> : vector<16x32xf32>
    %140 = tpu.matmul %138, %139, %cst_57 {dimension_numbers = #tpu.dot_dimension_numbers<[1], [0], [0], [1], [0, 0, 1, 1], [], []>, precision = #tpu.contract_precision<fp32>} : vector<16x64xf32>, vector<64x32xf32>, vector<16x32xf32> -> vector<16x32xf32>
    %c0_58 = arith.constant 0 : index
    %c0_59 = arith.constant 0 : index
    %141 = vector.load %arg10[%c0_58, %c0_59] : memref<1x32xf32, #tpu.memory_space<vmem>>, vector<1x32xf32>
    %142 = vector.shape_cast %141 : vector<1x32xf32> to vector<32xf32>
    %143 = vector.shape_cast %142 : vector<32xf32> to vector<1x32xf32>
    %144 = vector.broadcast %143 : vector<1x32xf32> to vector<16x32xf32>
    %145 = arith.addf %140, %144 : vector<16x32xf32>
    %146 = arith.addf %129, %145 : vector<16x32xf32>
    %cst_60 = arith.constant dense<0.000000e+00> : vector<16xf32>
    %147 = vector.multi_reduction <add>, %146, %cst_60 [1] : vector<16x32xf32> to vector<16xf32>
    %148 = vector.shape_cast %147 : vector<16xf32> to vector<16x1xf32>
    %cst_61 = arith.constant 3.200000e+01 : f32
    %149 = vector.broadcast %cst_61 : f32 to vector<16x1xf32>
    %150 = arith.divf %148, %149 : vector<16x1xf32>
    %151 = vector.broadcast %150 : vector<16x1xf32> to vector<16x32xf32>
    %152 = arith.subf %146, %151 : vector<16x32xf32>
    %153 = arith.mulf %152, %152 : vector<16x32xf32>
    %cst_62 = arith.constant dense<0.000000e+00> : vector<16xf32>
    %154 = vector.multi_reduction <add>, %153, %cst_62 [1] : vector<16x32xf32> to vector<16xf32>
    %155 = vector.shape_cast %154 : vector<16xf32> to vector<16x1xf32>
    %cst_63 = arith.constant 3.200000e+01 : f32
    %156 = vector.broadcast %cst_63 : f32 to vector<16x1xf32>
    %157 = arith.divf %155, %156 : vector<16x1xf32>
    %158 = vector.broadcast %150 : vector<16x1xf32> to vector<16x32xf32>
    %159 = arith.subf %146, %158 : vector<16x32xf32>
    %cst_64 = arith.constant 9.99999974E-6 : f32
    %160 = vector.broadcast %cst_64 : f32 to vector<16x1xf32>
    %161 = arith.addf %157, %160 : vector<16x1xf32>
    %162 = math.rsqrt %161 : vector<16x1xf32>
    %163 = vector.broadcast %162 : vector<16x1xf32> to vector<16x32xf32>
    %164 = arith.mulf %159, %163 : vector<16x32xf32>
    %c1_65 = arith.constant 1 : index
    %c0_66 = arith.constant 0 : index
    %165 = vector.load %arg11[%c1_65, %c0_66] : memref<2x32xf32, #tpu.memory_space<vmem>>, vector<1x32xf32>
    %166 = vector.shape_cast %165 : vector<1x32xf32> to vector<32xf32>
    %167 = vector.shape_cast %166 : vector<32xf32> to vector<1x32xf32>
    %168 = vector.broadcast %167 : vector<1x32xf32> to vector<16x32xf32>
    %169 = arith.mulf %164, %168 : vector<16x32xf32>
    %c1_67 = arith.constant 1 : index
    %c0_68 = arith.constant 0 : index
    %170 = vector.load %arg12[%c1_67, %c0_68] : memref<2x32xf32, #tpu.memory_space<vmem>>, vector<1x32xf32>
    %171 = vector.shape_cast %170 : vector<1x32xf32> to vector<32xf32>
    %172 = vector.shape_cast %171 : vector<32xf32> to vector<1x32xf32>
    %173 = vector.broadcast %172 : vector<1x32xf32> to vector<16x32xf32>
    %174 = arith.addf %169, %173 : vector<16x32xf32>
    %175 = vector.shape_cast %174 : vector<16x32xf32> to vector<2x8x32xf32>
    %c0_69 = arith.constant 0 : index
    %c0_70 = arith.constant 0 : index
    %c0_71 = arith.constant 0 : index
    %176 = vector.load %arg13[%c0_69, %c0_70, %c0_71] : memref<2x8x32xf32, #tpu.memory_space<vmem>>, vector<2x8x32xf32>
    tpu.vector_store %arg13[%c0_69, %c0_70, %c0_71], %175 {strides = array<i32>} : memref<2x8x32xf32, #tpu.memory_space<vmem>>, vector<2x8x32xf32>,
    return
  }
  func.func @transform_0(%arg0: i32) -> (i32, i32, i32) {
    %c0_i32 = arith.constant 0 : i32
    %c0_i32_0 = arith.constant 0 : i32
    %c0_i32_1 = arith.constant 0 : i32
    return %arg0, %c0_i32, %c0_i32_0 : i32, i32, i32
  }
  func.func @transform_1(%arg0: i32) -> (i32, i32, i32) {
    %c0_i32 = arith.constant 0 : i32
    %c0_i32_0 = arith.constant 0 : i32
    %c0_i32_1 = arith.constant 0 : i32
    return %arg0, %c0_i32, %c0_i32_0 : i32, i32, i32
  }
  func.func @transform_2(%arg0: i32) -> (i32, i32) {
    %c0_i32 = arith.constant 0 : i32
    %c0_i32_0 = arith.constant 0 : i32
    %c0_i32_1 = arith.constant 0 : i32
    return %c0_i32, %c0_i32_0 : i32, i32
  }
  func.func @transform_3(%arg0: i32) -> (i32, i32) {
    %c0_i32 = arith.constant 0 : i32
    %c0_i32_0 = arith.constant 0 : i32
    %c0_i32_1 = arith.constant 0 : i32
    return %c0_i32, %c0_i32_0 : i32, i32
  }
  func.func @transform_4(%arg0: i32) -> (i32, i32, i32) {
    %c0_i32 = arith.constant 0 : i32
    %c0_i32_0 = arith.constant 0 : i32
    %c0_i32_1 = arith.constant 0 : i32
    %c0_i32_2 = arith.constant 0 : i32
    return %c0_i32, %c0_i32_0, %c0_i32_1 : i32, i32, i32
  }
  func.func @transform_5(%arg0: i32) -> (i32, i32) {
    %c0_i32 = arith.constant 0 : i32
    %c0_i32_0 = arith.constant 0 : i32
    %c0_i32_1 = arith.constant 0 : i32
    return %c0_i32, %c0_i32_0 : i32, i32
  }
  func.func @transform_6(%arg0: i32) -> (i32, i32) {
    %c0_i32 = arith.constant 0 : i32
    %c0_i32_0 = arith.constant 0 : i32
    %c0_i32_1 = arith.constant 0 : i32
    return %c0_i32, %c0_i32_0 : i32, i32
  }
  func.func @transform_7(%arg0: i32) -> (i32, i32) {
    %c0_i32 = arith.constant 0 : i32
    %c0_i32_0 = arith.constant 0 : i32
    %c0_i32_1 = arith.constant 0 : i32
    return %c0_i32, %c0_i32_0 : i32, i32
  }
  func.func @transform_8(%arg0: i32) -> (i32, i32) {
    %c0_i32 = arith.constant 0 : i32
    %c0_i32_0 = arith.constant 0 : i32
    %c0_i32_1 = arith.constant 0 : i32
    return %c0_i32, %c0_i32_0 : i32, i32
  }
  func.func @transform_9(%arg0: i32) -> (i32, i32) {
    %c0_i32 = arith.constant 0 : i32
    %c0_i32_0 = arith.constant 0 : i32
    %c0_i32_1 = arith.constant 0 : i32
    return %c0_i32, %c0_i32_0 : i32, i32
  }
  func.func @transform_10(%arg0: i32) -> (i32, i32) {
    %c0_i32 = arith.constant 0 : i32
    %c0_i32_0 = arith.constant 0 : i32
    %c0_i32_1 = arith.constant 0 : i32
    return %c0_i32, %c0_i32_0 : i32, i32
  }
  func.func @transform_11(%arg0: i32) -> (i32, i32) {
    %c0_i32 = arith.constant 0 : i32
    %c0_i32_0 = arith.constant 0 : i32
    %c0_i32_1 = arith.constant 0 : i32
    return %c0_i32, %c0_i32_0 : i32, i32
  }
  func.func @transform_12(%arg0: i32) -> (i32, i32, i32) {
    %c0_i32 = arith.constant 0 : i32
    %c0_i32_0 = arith.constant 0 : i32
    %c0_i32_1 = arith.constant 0 : i32
    return %arg0, %c0_i32, %c0_i32_0 : i32, i32, i32
  }
}

</mosaic_0001>

<bundles_post_ra>
// kernel: tpu_custom_call.1
= control target key start
LH: loop header
LB: loop body
LE: loop exit
PB: predicated region body
PF: predicated region fallthrough
CT: control target
= control target key end

     0   :  { %17 = vsyncpa [#allocation3], 0  ;;  %s13798_s0 = inlined_call_operand.hbm [shape: f32[2,8,32], index: 0, kind: input, shape index: {}]   ;;  %s13799_s1 = inlined_call_operand.vmem [shape: f32[2,1,8], index: 1, kind: input, shape index: {}]   ;;  %s13800_s2 = inlined_call_operand.vmem [shape: f32[32,96], index: 2, kind: input, shape index: {}]   ;;  %s13801_s3 = inlined_call_operand.vmem [shape: f32[1,96], index: 3, kind: input, shape index: {}]   ;;  %s13802_s4 = inlined_call_operand.vmem [shape: f32[4,8,32], index: 4, kind: input, shape index: {}]   ;;  %s13803_s5 = inlined_call_operand.vmem [shape: f32[1,32], index: 5, kind: input, shape index: {}]   ;;  %s13804_s6 = inlined_call_operand.vmem [shape: f32[32,64], index: 6, kind: input, shape index: {}]   ;;  %s13805_s7 = inlined_call_operand.vmem [shape: f32[1,64], index: 7, kind: input, shape index: {}]   ;;  %s13806_s8 = inlined_call_operand.vmem [shape: f32[64,32], index: 8, kind: input, shape index: {}]   ;;  %s13807_s9 = inlined_call_operand.vmem [shape: f32[1,32], index: 9, kind: input, shape index: {}]   ;;  %s13808_s10 = inlined_call_operand.vmem [shape: f32[2,32], index: 10, kind: input, shape index: {}]   ;;  %s13809_s11 = inlined_call_operand.vmem [shape: f32[2,32], index: 11, kind: input, shape index: {}]   ;;  %s13810_s12 = inlined_call_operand.hbm [shape: f32[2,8,32], index: 12, kind: output, shape index: {}]  }
   0x1   :  { %18 = vsyncpa [#allocation4], 0  ;;  %s13012_s21 = smov [#allocation2]   ;;  %s12964_s25 = scalar_lea.hbm %s13798_s0, 256 }
   0x2   :  { %s24_s22 = sshll.u32 %s13012_s21, 4  ;;  %p12965_p0 = scmp.ne.s32.totalorder %s13798_s0, %s12964_s25  ;;  %s25_s22 = int_to_ptr.vmem [resolvable:$true] %s24_s22 }
   0x3   :  { %p12968_p1 = scmp.lt.u32.totalorder %s12964_s25, %s13798_s0 }
   0x5   :  { %p12970_p2 = pnand %p12968_p1, %p12965_p0 }
   0x7   :  { %12973 = shalt.err (!%p12970_p2)
}
   0x8   :  { %s12974_s30 = scalar_lea.vmem %s25_s22, 256  ;;  %p12979_p4 = scmp.lt.s32.totalorder %s25_s22, %s25_s22 }
   0x9   :  { %p12975_p3 = scmp.ne.s32.totalorder %s25_s22, %s12974_s30  ;;  %p12980_p5 = scmp.lt.s32.totalorder %s12974_s30, %s12974_s30 }
   0xb   :  { %p12981_p6 = por %p12980_p5, %p12979_p4 }
   0xd   :  { %p12982_p7 = pnand %p12981_p6, %p12975_p3 }
   0xf   :  { %12985 = shalt.err (!%p12982_p7)
}
  0x10   :  { %s13013_s13 = smov 128   ;;  %s13014_s14 = smov 8  }
  0x11   :  { %30 = dma.hbm_to_vmem [thread:$0]  %s13798_s0, 256, %s25_s22, [#allocation3], %s13013_s13, %s13013_s13, %s13014_s14  }
  0x12   :  { %13008 = dma.done.wait [#allocation3], 256  }
  0x13   :  { %13009 = vsyncadd [#allocation3], 4294967040  ;;  %vm69_vm0 = vcmask 261120   ;;  %v58_v0 = vld [vmem:[%s13800_s2] sm:$0xff]  ;;  %v59_v1 = vld [vmem:[%s13800_s2 + $0x8] sm:$0xff]  ;;  %v13015_v46 = vmov 0.0  }
  0x14   :  { %v60_v2 = vld [vmem:[%s13800_s2 + $0x10] sm:$0xff]  ;;  %v77_v3 = vand.u32 4294901760, %v58_v0  ;;  %v80_v4 = vand.u32 4294901760, %v59_v1  ;;  %v61_v5 = vld [vmem:[%s13800_s2 + $0x18] sm:$0xff]  ;;  %v56_v7 = vld [vmem:[#allocation2] sm:$0xff]  ;;  %11681 = vmatprep.subr.mxu1 %v13015_v46  ;;  %vm13016_vm1 = vmmov 0  }
  0x15   :  { %v83_v6 = vand.u32 4294901760, %v60_v2  ;;  %v57_v8 = vld [vmem:[#allocation2 + $0x8] sm:$0xff]  ;;  %v86_v9 = vand.u32 4294901760, %v61_v5  ;;  %v71_v10 = vsel %vm69_vm0, %v56_v7, 0  ;;  %11683 = vmatprep.mubr.msk.f32.mxu1 %vm13016_vm1, %v13015_v46  ;;  %v11206_v47 = vld [vmem:[%s13801_s3] ss:$0 sm:$0xff] }
  0x16   :  { %v74_v11 = vsel %vm69_vm0, %v57_v8, 0  ;;  %v13123_v12 = vpack.c.bf16 %v80_v4, %v77_v3  ;;  %v13125_v13 = vand.u32 4294901760, %v71_v10  ;;  %v167_v15 = vsub.f32 %v58_v0, %v77_v3  ;;  %s13017_s22 = smov 96   ;;  %s13018_s26 = smov 64  }
  0x17   :  { %v13127_v14 = vand.u32 4294901760, %v74_v11  ;;  %v13129_v16 = vpack.c.bf16 %v86_v9, %v83_v6  ;;  %v174_v17 = vsub.f32 %v59_v1, %v80_v4  ;;  %v181_v18 = vsub.f32 %v60_v2, %v83_v6  ;;  %s13019_s27 = smov 88   ;;  %s13020_s15 = smov 120  }
  0x18   :  { %v188_v19 = vsub.f32 %v61_v5, %v86_v9  ;;  %12462 = vmatprep.subr.bf16.mxu0 %v13123_v12  ;;  %v146_v20 = vsub.f32 %v71_v10, %v13125_v13  ;;  %v168_v22 = vand.u32 4294901760, %v167_v15  ;;  %vm621_vm2 = vcmask 64512   ;;  %s13021_s16 = smov 56   ;;  %s13022_s17 = smov 80  }
  0x19   :  { %v156_v21 = vsub.f32 %v74_v11, %v13127_v14  ;;  %12464 = vmatpush3.bf16.msra.mxu0 %v13123_v12  ;;  %v175_v23 = vand.u32 4294901760, %v174_v17  ;;  %v182_v24 = vand.u32 4294901760, %v181_v18  ;;  %v12477_v42 = vpack.c.bf16 %v174_v17, %v167_v15  ;;  %s13023_s18 = smov 112   ;;  %s13024_s24 = smov 48  }
  0x1a   :  { %v189_v25 = vand.u32 4294901760, %v188_v19  ;;  %12466 = vmatprep.subr.bf16.mxu0 %v13129_v16  ;;  %v147_v26 = vand.u32 4294901760, %v146_v20  ;;  %v169_v28 = vsub.f32 %v167_v15, %v168_v22  ;;  %v12481_v43 = vpack.c.bf16 %v188_v19, %v181_v18  ;;  %s13025_s25 = smov 72   ;;  %s13026_s0 = smov 104  }
  0x1b   :  { %v157_v27 = vand.u32 4294901760, %v156_v21  ;;  %v176_v29 = vsub.f32 %v174_v17, %v175_v23  ;;  %v183_v30 = vsub.f32 %v181_v18, %v182_v24  ;;  %v12493_v44 = vpack.c.bf16 %v175_v23, %v168_v22  ;;  %s13027_s29 = smov 40  }
  0x1c   :  { %v190_v31 = vsub.f32 %v188_v19, %v189_v25  ;;  %v148_v32 = vsub.f32 %v146_v20, %v147_v26  ;;  %v170_v34 = vand.u32 4294901760, %v169_v28  ;;  %v12497_v45 = vpack.c.bf16 %v189_v25, %v182_v24 }
  0x1d   :  { %v158_v33 = vsub.f32 %v156_v21, %v157_v27  ;;  %12468 = vmatpush3.bf16.msra.mxu0 %v13129_v16  ;;  %v177_v35 = vand.u32 4294901760, %v176_v29  ;;  %v184_v36 = vand.u32 4294901760, %v183_v30  ;;  %vm10558_vm3 = vcmask 523264  }
  0x1e   :  { %v191_v37 = vand.u32 4294901760, %v190_v31  ;;  %v149_v38 = vand.u32 4294901760, %v148_v32 }
  0x1f   :  { %v159_v39 = vand.u32 4294901760, %v158_v33  ;;  %v12469_v40 = vpack.c.bf16 %v177_v35, %v170_v34 }
  0x20   :  { %v12473_v41 = vpack.c.bf16 %v191_v37, %v184_v36  ;;  %11623 = vmatprep.mubr.f32.mxu0 %v149_v38 }
  0x21   :  { %11624 = vmatmul.mubr.f32.vlgmr.msra.gmra.mrb[0].mxu0 %v159_v39  ;;  %12470 = vmatprep.subr.bf16.mxu0 %v12469_v40 }
  0x22   :  { %12472 = vmatpush3.bf16.msra.mxu0 %v12469_v40  ;;  %11634 = vmatprep.mubr.f32.mxu0 %v13125_v13 }
  0x23   :  { %12474 = vmatprep.subr.bf16.mxu0 %v12473_v41 }
  0x26   :  { %12476 = vmatpush3.bf16.msra.mxu0 %v12473_v41 }
  0x27   :  { %12478 = vmatprep.subr.bf16.mxu0 %v12477_v42 }
  0x29   :  { %11635 = vmatmul.mubr.f32.vlgmr.msra.gmra.mrb[0].mxu0 %v13127_v14 }
  0x2a   :  { %12480 = vmatpush3.bf16.msra.mxu0 %v12477_v42  ;;  %11645 = vmatprep.mubr.f32.mxu0 %v146_v20 }
  0x2b   :  { %12482 = vmatprep.subr.bf16.mxu0 %v12481_v43 }
  0x2e   :  { %12484 = vmatpush3.bf16.msra.mxu0 %v12481_v43 }
  0x2f   :  { %12486 = vmatprep.subr.bf16.mxu0 %v13123_v12 }
  0x31   :  { %11646 = vmatmul.mubr.f32.vlgmr.msra.gmra.mrb[0].mxu0 %v156_v21  ;;  %v13230_v21 = vld [vmem:[%s13799_s1 + $0x1] ss:$0 sm:$0xff] }
  0x32   :  { %12488 = vmatpush3.bf16.msra.mxu0 %v13123_v12  ;;  %11656 = vmatprep.mubr.f32.mxu0 %v147_v26 }
  0x33   :  { %12490 = vmatprep.subr.bf16.mxu0 %v13129_v16 }
  0x36   :  { %12492 = vmatpush3.bf16.msra.mxu0 %v13129_v16 }
  0x37   :  { %12494 = vmatprep.subr.bf16.mxu0 %v12493_v44 }
  0x39   :  { %11657 = vmatmul.mubr.f32.vlgmr.msra.gmra.mrb[0].mxu0 %v157_v27 }
  0x3a   :  { %12496 = vmatpush3.bf16.msra.mxu0 %v12493_v44  ;;  %11667 = vmatprep.mubr.f32.mxu0 %v13125_v13 }
  0x3b   :  { %12498 = vmatprep.subr.bf16.mxu0 %v12497_v45 }
  0x3e   :  { %12500 = vmatpush3.bf16.msra.mxu0 %v12497_v45 }
  0x3f   :  { %12502 = vmatprep.subr.bf16.mxu0 %v13123_v12 }
  0x41   :  { %11668 = vmatmul.mubr.f32.vlgmr.msra.gmra.mrb[0].mxu0 %v13127_v14 }
  0x42   :  { %12504 = vmatpush3.bf16.msra.mxu0 %v13123_v12  ;;  %11678 = vmatprep.mubr.f32.mxu0 %v13125_v13 }
  0x43   :  { %12506 = vmatprep.subr.bf16.mxu0 %v13129_v16 }
  0x46   :  { %12508 = vmatpush3.bf16.msra.mxu0 %v13129_v16  ;;  %v13219_v16 = vld [vmem:[%s13799_s1] ss:$0 sm:$0xff] }
  0x47   :  { %11741 = vmatprep.subr.mxu0 %v13015_v46 }
  0x49   :  { %11679 = vmatmul.mubr.f32.vlgmr.msra.gmra.mrb[0].mxu0 %v13127_v14 }
  0x4a   :  { %11743 = vmatprep.mubr.msk.f32.mxu0 %vm13016_vm1, %v13015_v46 }
 0x11c   :  { %v11680_v48 = vpop.f32.mrb[0].mxu0 }
 0x11d   :  { %v594_v49 = vpop.f32.mrb[1].mxu0  ;;  %v13163_v51 = vadd.f32 %v11680_v48, %v11206_v47 }
 0x11e   :  { %v13160_v50 = vadd.f32 %v11206_v47, %v594_v49 }
 0x11f   :  { %v1075_v2 = vsel %vm621_vm2, %v13163_v51, 0 }
 0x120   :  { %619 = vrot.lane.b32.xlu0 %v13160_v50, %s13017_s22  ;;  %v622_v52 = vsel %vm621_vm2, %v13160_v50, 0  ;;  %v1145_v4 = vand.u32 4294901760, %v1075_v2 }
 0x121   :  { %v692_v53 = vand.u32 4294901760, %v622_v52 }
 0x122   :  { %v1146_v6 = vsub.f32 %v1075_v2, %v1145_v4 }
 0x123   :  { %v693_v54 = vsub.f32 %v622_v52, %v692_v53 }
 0x124   :  { %1073 = vrot.lane.b32.xlu0 %v13163_v51, %s13017_s22  ;;  %v1147_v8 = vand.u32 4294901760, %v1146_v6 }
 0x125   :  { %v694_v55 = vand.u32 4294901760, %v693_v54 }
 0x126   :  { %v1148_v10 = vsub.f32 %v1146_v6, %v1147_v8 }
 0x127   :  { %v695_v58 = vsub.f32 %v693_v54, %v694_v55 }
 0x128   :  { %1999 = vrot.lane.b32.xlu0 %v13163_v51, %s13018_s26  ;;  %v1149_v12 = vand.u32 4294901760, %v1148_v10 }
 0x129   :  { %v696_v61 = vand.u32 4294901760, %v695_v58 }
 0x12c   :  { %2908 = vrot.lane.b32.xlu0 %v13163_v51, %s13019_s27 }
 0x192   :  { %v620_v56 = vpop.permute.xlu0 %619 }
 0x193   :  { %v624_v57 = vsel %vm621_vm2, %v620_v56, 0 }
 0x194   :  { %v627_v59 = vand.u32 4294901760, %v624_v57 }
 0x196   :  { %v704_v60 = vsub.f32 %v624_v57, %v627_v59  ;;  %11682 = vmatpush3.xpose.msra.mxu1 %v627_v59  ;;  %v1074_v1 = vpop.permute.xlu0 %1073 }
 0x197   :  { %11686 = vmatprep.subr.mxu1 %v13015_v46  ;;  %v1077_v3 = vsel %vm621_vm2, %v1074_v1, 0 }
 0x198   :  { %v705_v62 = vand.u32 4294901760, %v704_v60  ;;  %v1080_v5 = vand.u32 4294901760, %v1077_v3 }
 0x199   :  { %11684 = vmatmul.mubr.f32.vlgmr.msra.gmra.mrb[0].mxu1 %v696_v61 }
 0x19a   :  { %v706_v63 = vsub.f32 %v704_v60, %v705_v62  ;;  %11688 = vmatprep.mubr.msk.f32.mxu1 %vm13016_vm1, %v13015_v46  ;;  %v1157_v7 = vsub.f32 %v1077_v3, %v1080_v5  ;;  %v2000_v14 = vpop.permute.xlu0 %1999 }
 0x19b   :  { %v13210_v15 = vand.u32 4294901760, %v2000_v14 }
 0x19c   :  { %v707_v0 = vand.u32 4294901760, %v706_v63  ;;  %v1158_v9 = vand.u32 4294901760, %v1157_v7 }
 0x19d   :  { %v2083_v41 = vsub.f32 %v2000_v14, %v13210_v15 }
 0x19e   :  { %11687 = vmatpush3.xpose.msra.mxu1 %v707_v0  ;;  %v1159_v11 = vsub.f32 %v1157_v7, %v1158_v9  ;;  %v2909_v26 = vpop.permute.xlu0 %2908 }
 0x19f   :  { %11691 = vmatprep.subr.mxu1 %v13015_v46  ;;  %v2084_v45 = vand.u32 4294901760, %v2083_v41  ;;  %v2912_v57 = vsel %vm621_vm2, %v2909_v26, 0 }
 0x1a0   :  { %v1160_v13 = vand.u32 4294901760, %v1159_v11 }
 0x1a1   :  { %11689 = vmatmul.mubr.f32.vlgmr.msra.gmra.mrb[0].mxu1 %v692_v53  ;;  %v2085_v49 = vsub.f32 %v2083_v41, %v2084_v45 }
 0x1a2   :  { %11692 = vmatpush3.xpose.msra.mxu1 %v704_v60  ;;  %11693 = vmatprep.mubr.msk.f32.mxu1 %vm13016_vm1, %v13015_v46 }
 0x1a3   :  { %11696 = vmatprep.subr.mxu1 %v13015_v46 }
 0x1a9   :  { %11694 = vmatmul.mubr.f32.vlgmr.msra.gmra.mrb[0].mxu1 %v693_v54  ;;  %v2086_v54 = vand.u32 4294901760, %v2085_v49 }
 0x1aa   :  { %11697 = vmatpush3.xpose.msra.mxu1 %v627_v59  ;;  %11698 = vmatprep.mubr.msk.f32.mxu1 %vm13016_vm1, %v13015_v46 }
 0x1ab   :  { %11701 = vmatprep.subr.mxu1 %v13015_v46 }
 0x1b1   :  { %11699 = vmatmul.mubr.f32.vlgmr.msra.gmra.mrb[0].mxu1 %v694_v55 }
 0x1b2   :  { %11702 = vmatpush3.xpose.msra.mxu1 %v705_v62  ;;  %11703 = vmatprep.mubr.msk.f32.mxu1 %vm13016_vm1, %v13015_v46 }
 0x1b3   :  { %11706 = vmatprep.subr.mxu1 %v13015_v46 }
 0x1b9   :  { %11704 = vmatmul.mubr.f32.vlgmr.msra.gmra.mrb[0].mxu1 %v692_v53 }
 0x1ba   :  { %11707 = vmatpush3.xpose.msra.mxu1 %v627_v59  ;;  %11708 = vmatprep.mubr.msk.f32.mxu1 %vm13016_vm1, %v13015_v46  ;;  %v13264_v59 = vand.u32 4294901760, %v2912_v57 }
 0x1bb   :  { %11711 = vmatprep.subr.mxu1 %v13015_v46 }
 0x1bc   :  { %v2992_v62 = vsub.f32 %v2912_v57, %v13264_v59 }
 0x1be   :  { %v2993_v0 = vand.u32 4294901760, %v2992_v62 }
 0x1c0   :  { %v2994_v3 = vsub.f32 %v2992_v62, %v2993_v0 }
 0x1c1   :  { %11709 = vmatmul.mubr.f32.vlgmr.msra.gmra.mrb[0].mxu1 %v692_v53 }
 0x1c2   :  { %11712 = vmatpush3.xpose.msra.mxu1 %v1080_v5  ;;  %11713 = vmatprep.mubr.msk.f32.mxu1 %vm13016_vm1, %v13015_v46 }
 0x1c3   :  { %11716 = vmatprep.subr.mxu1 %v13015_v46 }
 0x1c5   :  { %11714 = vmatmul.mubr.f32.vlgmr.msra.gmra.mrb[2].mxu1 %v1149_v12 }
 0x1c6   :  { %11717 = vmatpush3.xpose.msra.mxu1 %v1160_v13  ;;  %11718 = vmatprep.mubr.msk.f32.mxu1 %vm13016_vm1, %v13015_v46 }
 0x1c7   :  { %11721 = vmatprep.subr.mxu1 %v13015_v46 }
 0x1cd   :  { %11719 = vmatmul.mubr.f32.vlgmr.msra.gmra.mrb[2].mxu1 %v1145_v4 }
 0x1ce   :  { %11722 = vmatpush3.xpose.msra.mxu1 %v1157_v7  ;;  %11723 = vmatprep.mubr.msk.f32.mxu1 %vm13016_vm1, %v13015_v46 }
 0x1cf   :  { %11726 = vmatprep.subr.mxu1 %v13015_v46 }
 0x1d5   :  { %11724 = vmatmul.mubr.f32.vlgmr.msra.gmra.mrb[2].mxu1 %v1146_v6 }
 0x1d6   :  { %11727 = vmatpush3.xpose.msra.mxu1 %v1080_v5  ;;  %11728 = vmatprep.mubr.msk.f32.mxu1 %vm13016_vm1, %v13015_v46 }
 0x1d7   :  { %11731 = vmatprep.subr.mxu1 %v13015_v46 }
 0x1dd   :  { %11729 = vmatmul.mubr.f32.vlgmr.msra.gmra.mrb[2].mxu1 %v1147_v8  ;;  %v2995_v8 = vand.u32 4294901760, %v2994_v3 }
 0x1de   :  { %11732 = vmatpush3.xpose.msra.mxu1 %v1158_v9  ;;  %11733 = vmatprep.mubr.msk.f32.mxu1 %vm13016_vm1, %v13015_v46 }
 0x1df   :  { %11736 = vmatprep.subr.mxu1 %v13015_v46 }
 0x1e5   :  { %11734 = vmatmul.mubr.f32.vlgmr.msra.gmra.mrb[2].mxu1 %v1145_v4 }
 0x1e6   :  { %11737 = vmatpush3.xpose.msra.mxu1 %v1080_v5  ;;  %11738 = vmatprep.mubr.msk.f32.mxu1 %vm13016_vm1, %v13015_v46 }
 0x1e7   :  { %11771 = vmatprep.subr.mxu1 %v13015_v46 }
 0x1ed   :  { %11739 = vmatmul.mubr.f32.vlgmr.msra.gmra.mrb[2].mxu1 %v1145_v4 }
 0x1ee   :  { %11772 = vmatpush3.msra.mxu1 %v13210_v15  ;;  %11773 = vmatprep.mubr.msk.f32.mxu1 %vm13016_vm1, %v13015_v46 }
 0x1ef   :  { %11776 = vmatprep.subr.mxu1 %v13015_v46 }
 0x294   :  { %v1068_v17 = vpop.f32.mrb[0].mxu1 }
 0x295   :  { %v12655_v18 = vadd.f32 %v13219_v16, %v1068_v17  ;;  %v11710_v19 = vpop.f32.mrb[1].mxu1 }
 0x297   :  { %v1525_v20 = vsel %vm621_vm2, %v12655_v18, -inf }
 0x298   :  { %1526 = vmax.xlane.f32.xlu0 %v1525_v20 }
 0x2ae   :  { %1547 = vrot.lane.b32.xlu0 %v13160_v50, %s13018_s26 }
 0x2b2   :  { %2454 = vrot.lane.b32.xlu0 %v13160_v50, %s13019_s27 }
 0x2c0   :  { %v1521_v22 = vpop.f32.mrb[2].mxu1 }
 0x2c1   :  { %v12656_v23 = vadd.f32 %v13230_v21, %v1521_v22  ;;  %v11740_v24 = vpop.f32.mrb[3].mxu1 }
 0x2c3   :  { %v1528_v25 = vsel %vm621_vm2, %v12656_v23, -inf }
 0x2c4   :  { %1529 = vmax.xlane.f32.xlu1 %v1528_v25 }
 0x325   :  { %v1527_v27 = vpop.xlane.xlu0 %1526 }
 0x326   :  { %v1531_v35 = vsub.f32 %v12655_v18, %v1527_v27 }
 0x328   :  { %v1533_v36 = vmul.f32 1.442695, %v1531_v35 }
 0x329   :  { %v13234_v28 = vpop.permute.xlu0 %1547 }
 0x32a   :  { %v13237_v29 = vand.u32 4294901760, %v13234_v28 }
 0x32c   :  { %11742 = vmatpush3.msra.mxu0 %v13237_v29  ;;  %v1631_v4 = vsub.f32 %v13234_v28, %v13237_v29 }
 0x32d   :  { %11746 = vmatprep.subr.mxu0 %v13015_v46  ;;  %v2455_v19 = vpop.permute.xlu0 %2454 }
 0x32e   :  { %v1632_v10 = vand.u32 4294901760, %v1631_v4  ;;  %v2458_v22 = vsel %vm621_vm2, %v2455_v19, 0 }
 0x32f   :  { %v2461_v24 = vand.u32 4294901760, %v2458_v22 }
 0x330   :  { %v1633_v13 = vsub.f32 %v1631_v4, %v1632_v10 }
 0x331   :  { %v2538_v26 = vsub.f32 %v2458_v22, %v2461_v24 }
 0x332   :  { %v1634_v17 = vand.u32 4294901760, %v1633_v13 }
 0x333   :  { %v2539_v28 = vand.u32 4294901760, %v2538_v26 }
 0x351   :  { %v1530_v30 = vpop.xlane.xlu1 %1529 }
 0x352   :  { %v1532_v31 = vsub.f32 %v12656_v23, %v1530_v30 }
 0x354   :  { %v1535_v32 = vmul.f32 1.442695, %v1532_v31  ;;  %v2540_v31 = vsub.f32 %v2538_v26, %v2539_v28 }
 0x356   :  { %12920 = vpow2.f32 %v1535_v32 }
 0x357   :  { %12922 = vpow2.f32 %v1533_v36 }
 0x360   :  { %v12921_v33 = vpop.eup %12920 }
 0x361   :  { %v1540_v34 = vsel %vm621_vm2, %v12921_v33, 0.0  ;;  %v12923_v37 = vpop.eup %12922 }
 0x362   :  { %1541 = vadd.xlane.f32.xlu1 %v1540_v34  ;;  %v1537_v38 = vsel %vm621_vm2, %v12923_v37, 0.0 }
 0x373   :  { %2906 = vrot.lane.b32.xlu1 %v13163_v51, %s13020_s15 }
 0x397   :  { %1538 = vadd.xlane.f32.xlu1 %v1537_v38 }
 0x3a8   :  { %2452 = vrot.lane.b32.xlu1 %v13160_v50, %s13020_s15 }
 0x3ef   :  { %v1542_v39 = vpop.xlane.xlu1 %1541 }
 0x3f0   :  { %12924 = vrcp.f32 %v1542_v39 }
 0x3f3   :  { %v2907_v55 = vpop.permute.xlu1 %2906 }
 0x3f4   :  { %v2910_v56 = vsel %vm621_vm2, %v2907_v55, 0 }
 0x3f5   :  { %v13261_v58 = vand.u32 4294901760, %v2910_v56 }
 0x3f7   :  { %v2981_v61 = vsub.f32 %v2910_v56, %v13261_v58 }
 0x3f9   :  { %v2982_v63 = vand.u32 4294901760, %v2981_v61 }
 0x3fa   :  { %v12925_v40 = vpop.eup %12924 }
 0x3fb   :  { %v1546_v42 = vmul.f32 %v12925_v40, %v12921_v33  ;;  %v2983_v1 = vsub.f32 %v2981_v61, %v2982_v63  ;;  %v2541_v33 = vand.u32 4294901760, %v2540_v31 }
 0x3fd   :  { %v2003_v43 = vsel %vm621_vm2, %v1546_v42, 0  ;;  %v2984_v6 = vand.u32 4294901760, %v2983_v1 }
 0x3fe   :  { %v2071_v44 = vand.u32 4294901760, %v2003_v43 }
 0x400   :  { %v2072_v47 = vsub.f32 %v2003_v43, %v2071_v44 }
 0x402   :  { %v2073_v48 = vand.u32 4294901760, %v2072_v47 }
 0x404   :  { %v2074_v52 = vsub.f32 %v2072_v47, %v2073_v48 }
 0x406   :  { %v2075_v53 = vand.u32 4294901760, %v2074_v52 }
 0x408   :  { %11774 = vmatmul.mubr.f32.vlgmr.msra.gmra.mrb[4].mxu1 %v2075_v53 }
 0x409   :  { %11777 = vmatpush3.msra.mxu1 %v2086_v54  ;;  %11778 = vmatprep.mubr.msk.f32.mxu1 %vm13016_vm1, %v13015_v46 }
 0x40a   :  { %11781 = vmatprep.subr.mxu1 %v13015_v46 }
 0x410   :  { %11779 = vmatmul.mubr.f32.vlgmr.msra.gmra.mrb[4].mxu1 %v2071_v44 }
 0x411   :  { %11782 = vmatpush3.msra.mxu1 %v2083_v41  ;;  %11783 = vmatprep.mubr.msk.f32.mxu1 %vm13016_vm1, %v13015_v46 }
 0x412   :  { %11786 = vmatprep.subr.mxu1 %v13015_v46 }
 0x418   :  { %11784 = vmatmul.mubr.f32.vlgmr.msra.gmra.mrb[4].mxu1 %v2072_v47 }
 0x419   :  { %11787 = vmatpush3.msra.mxu1 %v13210_v15  ;;  %11788 = vmatprep.mubr.msk.f32.mxu1 %vm13016_vm1, %v13015_v46 }
 0x41a   :  { %11791 = vmatprep.subr.mxu1 %v13015_v46 }
 0x420   :  { %11789 = vmatmul.mubr.f32.vlgmr.msra.gmra.mrb[4].mxu1 %v2073_v48 }
 0x421   :  { %11792 = vmatpush3.msra.mxu1 %v2084_v45  ;;  %11793 = vmatprep.mubr.msk.f32.mxu1 %vm13016_vm1, %v13015_v46 }
 0x422   :  { %11796 = vmatprep.subr.mxu1 %v13015_v46 }
 0x424   :  { %v1539_v60 = vpop.xlane.xlu1 %1538 }
 0x425   :  { %12926 = vrcp.f32 %v1539_v60 }
 0x428   :  { %11794 = vmatmul.mubr.f32.vlgmr.msra.gmra.mrb[4].mxu1 %v2071_v44  ;;  %v2453_v18 = vpop.permute.xlu1 %2452 }
 0x429   :  { %11797 = vmatpush3.msra.mxu1 %v13210_v15  ;;  %11798 = vmatprep.mubr.msk.f32.mxu1 %vm13016_vm1, %v13015_v46  ;;  %v2456_v20 = vsel %vm621_vm2, %v2453_v18, 0 }
 0x42a   :  { %11831 = vmatprep.subr.mxu1 %v13015_v46  ;;  %v2526_v23 = vand.u32 4294901760, %v2456_v20 }
 0x42c   :  { %v2527_v25 = vsub.f32 %v2456_v20, %v2526_v23 }
 0x42e   :  { %v2528_v27 = vand.u32 4294901760, %v2527_v25 }
 0x42f   :  { %v12927_v2 = vpop.eup %12926 }
 0x430   :  { %v1545_v5 = vmul.f32 %v12927_v2, %v12923_v37  ;;  %11799 = vmatmul.mubr.f32.vlgmr.msra.gmra.mrb[4].mxu1 %v2071_v44  ;;  %v2529_v30 = vsub.f32 %v2527_v25, %v2528_v27 }
 0x431   :  { %11832 = vmatpush3.xpose.msra.mxu1 %v13264_v59  ;;  %11833 = vmatprep.mubr.msk.f32.mxu1 %vm13016_vm1, %v13015_v46 }
 0x432   :  { %11836 = vmatprep.subr.mxu1 %v13015_v46  ;;  %v1551_v7 = vsel %vm621_vm2, %v1545_v5, 0  ;;  %v2530_v32 = vand.u32 4294901760, %v2529_v30 }
 0x433   :  { %v1619_v9 = vand.u32 4294901760, %v1551_v7 }
 0x434   :  { %11834 = vmatmul.mubr.f32.vlgmr.msra.gmra.mrb[6].mxu1 %v2984_v6 }
 0x435   :  { %11837 = vmatpush3.xpose.msra.mxu1 %v2995_v8  ;;  %11838 = vmatprep.mubr.msk.f32.mxu1 %vm13016_vm1, %v13015_v46  ;;  %v1620_v11 = vsub.f32 %v1551_v7, %v1619_v9 }
 0x436   :  { %11841 = vmatprep.subr.mxu1 %v13015_v46 }
 0x437   :  { %v1621_v12 = vand.u32 4294901760, %v1620_v11 }
 0x439   :  { %v1622_v14 = vsub.f32 %v1620_v11, %v1621_v12 }
 0x43b   :  { %v1623_v15 = vand.u32 4294901760, %v1622_v14 }
 0x43c   :  { %11839 = vmatmul.mubr.f32.vlgmr.msra.gmra.mrb[6].mxu1 %v13261_v58 }
 0x43d   :  { %11842 = vmatpush3.xpose.msra.mxu1 %v2992_v62  ;;  %11744 = vmatmul.mubr.f32.vlgmr.msra.gmra.mrb[2].mxu0 %v1623_v15 }
 0x43e   :  { %11747 = vmatpush3.msra.mxu0 %v1634_v17  ;;  %11843 = vmatprep.mubr.msk.f32.mxu1 %vm13016_vm1, %v13015_v46 }
 0x43f   :  { %11846 = vmatprep.subr.mxu1 %v13015_v46  ;;  %11748 = vmatprep.mubr.msk.f32.mxu0 %vm13016_vm1, %v13015_v46 }
 0x440   :  { %11751 = vmatprep.subr.mxu0 %v13015_v46 }
 0x444   :  { %11844 = vmatmul.mubr.f32.vlgmr.msra.gmra.mrb[6].mxu1 %v2981_v61 }
 0x445   :  { %11847 = vmatpush3.xpose.msra.mxu1 %v13264_v59  ;;  %11749 = vmatmul.mubr.f32.vlgmr.msra.gmra.mrb[2].mxu0 %v1619_v9 }
 0x446   :  { %11752 = vmatpush3.msra.mxu0 %v1631_v4  ;;  %11848 = vmatprep.mubr.msk.f32.mxu1 %vm13016_vm1, %v13015_v46 }
 0x447   :  { %11851 = vmatprep.subr.mxu1 %v13015_v46  ;;  %11753 = vmatprep.mubr.msk.f32.mxu0 %vm13016_vm1, %v13015_v46 }
 0x448   :  { %11756 = vmatprep.subr.mxu0 %v13015_v46 }
 0x44c   :  { %11849 = vmatmul.mubr.f32.vlgmr.msra.gmra.mrb[6].mxu1 %v2982_v63 }
 0x44d   :  { %11852 = vmatpush3.xpose.msra.mxu1 %v2993_v0  ;;  %11754 = vmatmul.mubr.f32.vlgmr.msra.gmra.mrb[2].mxu0 %v1620_v11 }
 0x44e   :  { %11757 = vmatpush3.msra.mxu0 %v13237_v29  ;;  %11853 = vmatprep.mubr.msk.f32.mxu1 %vm13016_vm1, %v13015_v46 }
 0x44f   :  { %11856 = vmatprep.subr.mxu1 %v13015_v46  ;;  %11758 = vmatprep.mubr.msk.f32.mxu0 %vm13016_vm1, %v13015_v46 }
 0x450   :  { %11761 = vmatprep.subr.mxu0 %v13015_v46 }
 0x454   :  { %11854 = vmatmul.mubr.f32.vlgmr.msra.gmra.mrb[6].mxu1 %v13261_v58 }
 0x455   :  { %11857 = vmatpush3.xpose.msra.mxu1 %v13264_v59  ;;  %11759 = vmatmul.mubr.f32.vlgmr.msra.gmra.mrb[2].mxu0 %v1621_v12 }
 0x456   :  { %11762 = vmatpush3.msra.mxu0 %v1632_v10  ;;  %11858 = vmatprep.mubr.msk.f32.mxu1 %vm13016_vm1, %v13015_v46 }
 0x457   :  { %11763 = vmatprep.mubr.msk.f32.mxu0 %vm13016_vm1, %v13015_v46  ;;  %11766 = vmatprep.subr.mxu0 %v13015_v46 }
 0x458   :  { %11891 = vmatprep.subr.mxu1 %v13015_v46 }
 0x45c   :  { %11859 = vmatmul.mubr.f32.vlgmr.msra.gmra.mrb[6].mxu1 %v13261_v58 }
 0x45d   :  { %11764 = vmatmul.mubr.f32.vlgmr.msra.gmra.mrb[2].mxu0 %v1619_v9  ;;  %11893 = vmatprep.mubr.msk.f32.mxu1 %vm13016_vm1, %v13015_v46 }
 0x45e   :  { %11767 = vmatpush3.msra.mxu0 %v13237_v29  ;;  %11768 = vmatprep.mubr.msk.f32.mxu0 %vm13016_vm1, %v13015_v46 }
 0x45f   :  { %11801 = vmatprep.subr.mxu0 %v13015_v46 }
 0x465   :  { %11769 = vmatmul.mubr.f32.vlgmr.msra.gmra.mrb[2].mxu0 %v1619_v9 }
 0x466   :  { %11802 = vmatpush3.xpose.msra.mxu0 %v2461_v24  ;;  %11803 = vmatprep.mubr.msk.f32.mxu0 %vm13016_vm1, %v13015_v46 }
 0x467   :  { %11806 = vmatprep.subr.mxu0 %v13015_v46 }
 0x469   :  { %11804 = vmatmul.mubr.f32.vlgmr.msra.gmra.mrb[4].mxu0 %v2530_v32 }
 0x46a   :  { %11807 = vmatpush3.xpose.msra.mxu0 %v2541_v33  ;;  %11808 = vmatprep.mubr.msk.f32.mxu0 %vm13016_vm1, %v13015_v46 }
 0x46b   :  { %11811 = vmatprep.subr.mxu0 %v13015_v46 }
 0x471   :  { %11809 = vmatmul.mubr.f32.vlgmr.msra.gmra.mrb[4].mxu0 %v2526_v23 }
 0x472   :  { %11812 = vmatpush3.xpose.msra.mxu0 %v2538_v26  ;;  %11813 = vmatprep.mubr.msk.f32.mxu0 %vm13016_vm1, %v13015_v46 }
 0x473   :  { %11816 = vmatprep.subr.mxu0 %v13015_v46 }
 0x479   :  { %11814 = vmatmul.mubr.f32.vlgmr.msra.gmra.mrb[4].mxu0 %v2527_v25 }
 0x47a   :  { %11817 = vmatpush3.xpose.msra.mxu0 %v2461_v24  ;;  %11818 = vmatprep.mubr.msk.f32.mxu0 %vm13016_vm1, %v13015_v46 }
 0x47b   :  { %11821 = vmatprep.subr.mxu0 %v13015_v46 }
 0x481   :  { %11819 = vmatmul.mubr.f32.vlgmr.msra.gmra.mrb[4].mxu0 %v2528_v27 }
 0x482   :  { %11822 = vmatpush3.xpose.msra.mxu0 %v2539_v28  ;;  %11823 = vmatprep.mubr.msk.f32.mxu0 %vm13016_vm1, %v13015_v46 }
 0x483   :  { %11826 = vmatprep.subr.mxu0 %v13015_v46 }
 0x489   :  { %11824 = vmatmul.mubr.f32.vlgmr.msra.gmra.mrb[4].mxu0 %v2526_v23 }
 0x48a   :  { %11827 = vmatpush3.xpose.msra.mxu0 %v2461_v24  ;;  %11828 = vmatprep.mubr.msk.f32.mxu0 %vm13016_vm1, %v13015_v46 }
 0x48b   :  { %11861 = vmatprep.subr.mxu0 %v13015_v46 }
 0x491   :  { %11829 = vmatmul.mubr.f32.vlgmr.msra.gmra.mrb[4].mxu0 %v2526_v23 }
 0x492   :  { %11863 = vmatprep.mubr.msk.f32.mxu0 %vm13016_vm1, %v13015_v46 }
 0x503   :  { %v13340_v29 = vpop.f32.mrb[4].mxu1 }
 0x504   :  { %v11800_v34 = vpop.f32.mrb[5].mxu1 }
 0x52f   :  { %v3356_v35 = vpop.f32.mrb[6].mxu1 }
 0x530   :  { %v12658_v36 = vadd.f32 %v13230_v21, %v3356_v35  ;;  %v11860_v37 = vpop.f32.mrb[7].mxu1 }
 0x532   :  { %v3363_v38 = vsel %vm621_vm2, %v12658_v36, -inf }
 0x533   :  { %3364 = vmax.xlane.f32.xlu0 %v3363_v38 }
 0x538   :  { %v13344_v39 = vpop.f32.mrb[2].mxu0 }
 0x539   :  { %v11770_v40 = vpop.f32.mrb[3].mxu0 }
 0x549   :  { %3834 = vrot.lane.b32.xlu0 %v13163_v51, %s13021_s16 }
 0x54d   :  { %5280 = vrot.lane.b32.xlu0 %v13160_v50, %s13022_s17 }
 0x564   :  { %v2902_v41 = vpop.f32.mrb[4].mxu0 }
 0x565   :  { %v11830_v42 = vpop.f32.mrb[5].mxu0  ;;  %v12657_v43 = vadd.f32 %v13219_v16, %v2902_v41 }
 0x567   :  { %v3360_v44 = vsel %vm621_vm2, %v12657_v43, -inf }
 0x56c   :  { %3361 = vmax.xlane.f32.xlu0 %v3360_v44 }
 0x582   :  { %3382 = vrot.lane.b32.xlu0 %v13160_v50, %s13021_s16 }
 0x5c0   :  { %v3365_v45 = vpop.xlane.xlu0 %3364 }
 0x5c1   :  { %v3367_v47 = vsub.f32 %v12658_v36, %v3365_v45 }
 0x5c3   :  { %v3370_v48 = vmul.f32 1.442695, %v3367_v47 }
 0x5c4   :  { %v3835_v49 = vpop.permute.xlu0 %3834 }
 0x5c5   :  { %12928 = vpow2.f32 %v3370_v48  ;;  %v3841_v52 = vand.u32 4294901760, %v3835_v49 }
 0x5c7   :  { %11892 = vmatpush3.msra.mxu1 %v3841_v52  ;;  %v3918_v1 = vsub.f32 %v3835_v49, %v3841_v52 }
 0x5c8   :  { %11896 = vmatprep.subr.mxu1 %v13015_v46  ;;  %v5281_v55 = vpop.permute.xlu0 %5280 }
 0x5c9   :  { %v3919_v5 = vand.u32 4294901760, %v3918_v1  ;;  %v5284_v14 = vsel %vm621_vm2, %v5281_v55, 0 }
 0x5ca   :  { %v5287_v18 = vand.u32 4294901760, %v5284_v14 }
 0x5cb   :  { %v3920_v8 = vsub.f32 %v3918_v1, %v3919_v5 }
 0x5cc   :  { %v5364_v20 = vsub.f32 %v5284_v14, %v5287_v18 }
 0x5cd   :  { %v3921_v11 = vand.u32 4294901760, %v3920_v8 }
 0x5ce   :  { %v5365_v24 = vand.u32 4294901760, %v5364_v20 }
 0x5cf   :  { %v12929_v53 = vpop.eup %12928 }
 0x5d0   :  { %v3375_v54 = vsel %vm621_vm2, %v12929_v53, 0.0  ;;  %v5366_v27 = vsub.f32 %v5364_v20, %v5365_v24 }
 0x5d1   :  { %3376 = vadd.xlane.f32.xlu1 %v3375_v54 }
 0x5d2   :  { %v5367_v30 = vand.u32 4294901760, %v5366_v27  ;;  %v4784_v27 = vsel %vm621_vm2, %v13344_v39, 0 }
 0x5e2   :  { %5278 = vrot.lane.b32.xlu1 %v13160_v50, %s13023_s18 }
 0x5e6   :  { %5732 = vrot.lane.b32.xlu1 %v13163_v51, %s13023_s18 }
 0x5ea   :  { %5734 = vrot.lane.b32.xlu1 %v13163_v51, %s13022_s17 }
 0x5f9   :  { %v3362_v56 = vpop.xlane.xlu0 %3361 }
 0x5fa   :  { %v3366_v57 = vsub.f32 %v12657_v43, %v3362_v56 }
 0x5fc   :  { %v3368_v58 = vmul.f32 1.442695, %v3366_v57 }
 0x5fd   :  { %v13356_v59 = vpop.permute.xlu0 %3382 }
 0x5fe   :  { %v13359_v60 = vand.u32 4294901760, %v13356_v59  ;;  %12930 = vpow2.f32 %v3368_v58 }
 0x600   :  { %11862 = vmatpush3.msra.mxu0 %v13359_v60  ;;  %v3466_v32 = vsub.f32 %v13356_v59, %v13359_v60  ;;  %v11209_v59 = vld [vmem:[%s13802_s4 + $0x8] sm:$0xff] }
 0x601   :  { %11866 = vmatprep.subr.mxu0 %v13015_v46 }
 0x602   :  { %v3467_v36 = vand.u32 4294901760, %v3466_v32 }
 0x604   :  { %v3468_v40 = vsub.f32 %v3466_v32, %v3467_v36 }
 0x606   :  { %v3469_v43 = vand.u32 4294901760, %v3468_v40 }
 0x608   :  { %v13363_v61 = vpop.eup %12930 }
 0x609   :  { %v3372_v62 = vsel %vm621_vm2, %v13363_v61, 0.0 }
 0x60e   :  { %3373 = vadd.xlane.f32.xlu1 %v3372_v62 }
 0x65e   :  { %v3377_v63 = vpop.xlane.xlu1 %3376 }
 0x65f   :  { %12932 = vrcp.f32 %v3377_v63 }
 0x662   :  { %v5279_v12 = vpop.permute.xlu1 %5278 }
 0x663   :  { %v5282_v13 = vsel %vm621_vm2, %v5279_v12, 0 }
 0x664   :  { %v13381_v15 = vand.u32 4294901760, %v5282_v13 }
 0x666   :  { %v5733_v17 = vpop.permute.xlu1 %5732  ;;  %v5353_v19 = vsub.f32 %v5282_v13, %v13381_v15 }
 0x667   :  { %v5736_v44 = vsel %vm621_vm2, %v5733_v17, 0 }
 0x668   :  { %v5354_v23 = vand.u32 4294901760, %v5353_v19  ;;  %v5806_v47 = vand.u32 4294901760, %v5736_v44 }
 0x669   :  { %v12933_v0 = vpop.eup %12932 }
 0x66a   :  { %v3381_v2 = vmul.f32 %v12933_v0, %v12929_v53  ;;  %v5735_v22 = vpop.permute.xlu1 %5734  ;;  %v5355_v26 = vsub.f32 %v5353_v19, %v5354_v23  ;;  %v5807_v49 = vsub.f32 %v5736_v44, %v5806_v47 }
 0x66b   :  { %v5738_v45 = vsel %vm621_vm2, %v5735_v22, 0 }
 0x66c   :  { %v3838_v3 = vsel %vm621_vm2, %v3381_v2, 0  ;;  %v5356_v28 = vand.u32 4294901760, %v5355_v26  ;;  %v5741_v48 = vand.u32 4294901760, %v5738_v45  ;;  %v5808_v53 = vand.u32 4294901760, %v5807_v49  ;;  %v2451_v26 = vld [vmem:[%s13802_s4] sm:$0xff] }
 0x66d   :  { %v3906_v4 = vand.u32 4294901760, %v3838_v3 }
 0x66e   :  { %v5809_v55 = vsub.f32 %v5807_v49, %v5808_v53 }
 0x66f   :  { %v3907_v6 = vsub.f32 %v3838_v3, %v3906_v4 }
 0x670   :  { %v5810_v57 = vand.u32 4294901760, %v5809_v55 }
 0x671   :  { %v3908_v7 = vand.u32 4294901760, %v3907_v6 }
 0x673   :  { %v3909_v9 = vsub.f32 %v3907_v6, %v3908_v7 }
 0x675   :  { %v3910_v10 = vand.u32 4294901760, %v3909_v9 }
 0x677   :  { %11894 = vmatmul.mubr.f32.vlgmr.msra.gmra.mrb[8].mxu1 %v3910_v10 }
 0x678   :  { %11897 = vmatpush3.msra.mxu1 %v3921_v11  ;;  %11898 = vmatprep.mubr.msk.f32.mxu1 %vm13016_vm1, %v13015_v46 }
 0x679   :  { %11901 = vmatprep.subr.mxu1 %v13015_v46 }
 0x67f   :  { %11899 = vmatmul.mubr.f32.vlgmr.msra.gmra.mrb[8].mxu1 %v3906_v4 }
 0x680   :  { %11902 = vmatpush3.msra.mxu1 %v3918_v1  ;;  %11903 = vmatprep.mubr.msk.f32.mxu1 %vm13016_vm1, %v13015_v46 }
 0x681   :  { %11906 = vmatprep.subr.mxu1 %v13015_v46 }
 0x687   :  { %11904 = vmatmul.mubr.f32.vlgmr.msra.gmra.mrb[8].mxu1 %v3907_v6 }
 0x688   :  { %11907 = vmatpush3.msra.mxu1 %v3841_v52  ;;  %11908 = vmatprep.mubr.msk.f32.mxu1 %vm13016_vm1, %v13015_v46 }
 0x689   :  { %11911 = vmatprep.subr.mxu1 %v13015_v46 }
 0x68f   :  { %11909 = vmatmul.mubr.f32.vlgmr.msra.gmra.mrb[8].mxu1 %v3908_v7 }
 0x690   :  { %11912 = vmatpush3.msra.mxu1 %v3919_v5  ;;  %11913 = vmatprep.mubr.msk.f32.mxu1 %vm13016_vm1, %v13015_v46 }
 0x691   :  { %11916 = vmatprep.subr.mxu1 %v13015_v46 }
 0x697   :  { %11914 = vmatmul.mubr.f32.vlgmr.msra.gmra.mrb[8].mxu1 %v3906_v4 }
 0x698   :  { %11917 = vmatpush3.msra.mxu1 %v3841_v52  ;;  %11918 = vmatprep.mubr.msk.f32.mxu1 %vm13016_vm1, %v13015_v46  ;;  %v5818_v52 = vsub.f32 %v5738_v45, %v5741_v48 }
 0x699   :  { %11981 = vmatprep.subr.mxu1 %v13015_v46 }
 0x69a   :  { %v5819_v54 = vand.u32 4294901760, %v5818_v52 }
 0x69b   :  { %v3374_v25 = vpop.xlane.xlu1 %3373 }
 0x69c   :  { %12934 = vrcp.f32 %v3374_v25  ;;  %v5820_v56 = vsub.f32 %v5818_v52, %v5819_v54 }
 0x69e   :  { %v5821_v58 = vand.u32 4294901760, %v5820_v56 }
 0x69f   :  { %11919 = vmatmul.mubr.f32.vlgmr.msra.gmra.mrb[8].mxu1 %v3906_v4 }
 0x6a0   :  { %11982 = vmatpush3.xpose.msra.mxu1 %v5287_v18  ;;  %11983 = vmatprep.mubr.msk.f32.mxu1 %vm13016_vm1, %v13015_v46 }
 0x6a1   :  { %11986 = vmatprep.subr.mxu1 %v13015_v46 }
 0x6a3   :  { %11984 = vmatmul.mubr.f32.vlgmr.msra.gmra.mrb[10].mxu1 %v5356_v28  ;;  %v4790_v28 = vand.u32 4294901760, %v2451_v26 }
 0x6a4   :  { %11987 = vmatpush3.xpose.msra.mxu1 %v5367_v30  ;;  %11988 = vmatprep.mubr.msk.f32.mxu1 %vm13016_vm1, %v13015_v46  ;;  %v4855_v30 = vand.u32 4294901760, %v4784_v27 }
 0x6a5   :  { %11991 = vmatprep.subr.mxu1 %v13015_v46 }
 0x6a6   :  { %v12935_v31 = vpop.eup %12934 }
 0x6a7   :  { %v3380_v33 = vmul.f32 %v12935_v31, %v13363_v61  ;;  %v4787_v31 = vsel %vm621_vm2, %v13340_v29, 0 }
 0x6a9   :  { %v3386_v34 = vsel %vm621_vm2, %v3380_v33, 0  ;;  %v4865_v33 = vand.u32 4294901760, %v4787_v31 }
 0x6aa   :  { %v13398_v35 = vand.u32 4294901760, %v3386_v34 }
 0x6ab   :  { %11989 = vmatmul.mubr.f32.vlgmr.msra.gmra.mrb[10].mxu1 %v13381_v15 }
 0x6ac   :  { %11992 = vmatpush3.xpose.msra.mxu1 %v5364_v20  ;;  %11993 = vmatprep.mubr.msk.f32.mxu1 %vm13016_vm1, %v13015_v46  ;;  %v3455_v37 = vsub.f32 %v3386_v34, %v13398_v35 }
 0x6ad   :  { %11996 = vmatprep.subr.mxu1 %v13015_v46 }
 0x6ae   :  { %v3456_v38 = vand.u32 4294901760, %v3455_v37 }
 0x6b0   :  { %v3457_v41 = vsub.f32 %v3455_v37, %v3456_v38 }
 0x6b2   :  { %v3458_v42 = vand.u32 4294901760, %v3457_v41 }
 0x6b3   :  { %11994 = vmatmul.mubr.f32.vlgmr.msra.gmra.mrb[10].mxu1 %v5353_v19 }
 0x6b4   :  { %11997 = vmatpush3.xpose.msra.mxu1 %v5287_v18  ;;  %11864 = vmatmul.mubr.f32.vlgmr.msra.gmra.mrb[6].mxu0 %v3458_v42 }
 0x6b5   :  { %11867 = vmatpush3.msra.mxu0 %v3469_v43  ;;  %11998 = vmatprep.mubr.msk.f32.mxu1 %vm13016_vm1, %v13015_v46 }
 0x6b6   :  { %12001 = vmatprep.subr.mxu1 %v13015_v46  ;;  %11868 = vmatprep.mubr.msk.f32.mxu0 %vm13016_vm1, %v13015_v46 }
 0x6b7   :  { %11871 = vmatprep.subr.mxu0 %v13015_v46 }
 0x6bb   :  { %11999 = vmatmul.mubr.f32.vlgmr.msra.gmra.mrb[10].mxu1 %v5354_v23 }
 0x6bc   :  { %12002 = vmatpush3.xpose.msra.mxu1 %v5365_v24  ;;  %11869 = vmatmul.mubr.f32.vlgmr.msra.gmra.mrb[6].mxu0 %v13398_v35 }
 0x6bd   :  { %11872 = vmatpush3.msra.mxu0 %v3466_v32  ;;  %12003 = vmatprep.mubr.msk.f32.mxu1 %vm13016_vm1, %v13015_v46  ;;  %v4856_v32 = vsub.f32 %v4784_v27, %v4855_v30 }
 0x6be   :  { %12006 = vmatprep.subr.mxu1 %v13015_v46  ;;  %11873 = vmatprep.mubr.msk.f32.mxu0 %vm13016_vm1, %v13015_v46 }
 0x6bf   :  { %11876 = vmatprep.subr.mxu0 %v13015_v46 }
 0x6c3   :  { %12004 = vmatmul.mubr.f32.vlgmr.msra.gmra.mrb[10].mxu1 %v13381_v15 }
 0x6c4   :  { %12007 = vmatpush3.xpose.msra.mxu1 %v5287_v18  ;;  %11874 = vmatmul.mubr.f32.vlgmr.msra.gmra.mrb[6].mxu0 %v3455_v37 }
 0x6c5   :  { %11877 = vmatpush3.msra.mxu0 %v13359_v60  ;;  %12008 = vmatprep.mubr.msk.f32.mxu1 %vm13016_vm1, %v13015_v46 }
 0x6c6   :  { %12011 = vmatprep.subr.mxu1 %v13015_v46  ;;  %11878 = vmatprep.mubr.msk.f32.mxu0 %vm13016_vm1, %v13015_v46 }
 0x6c7   :  { %11881 = vmatprep.subr.mxu0 %v13015_v46 }
 0x6cb   :  { %12009 = vmatmul.mubr.f32.vlgmr.msra.gmra.mrb[10].mxu1 %v13381_v15 }
 0x6cc   :  { %12012 = vmatpush3.xpose.msra.mxu1 %v5741_v48  ;;  %11879 = vmatmul.mubr.f32.vlgmr.msra.gmra.mrb[6].mxu0 %v3456_v38 }
 0x6cd   :  { %11882 = vmatpush3.msra.mxu0 %v3467_v36  ;;  %12013 = vmatprep.mubr.msk.f32.mxu1 %vm13016_vm1, %v13015_v46  ;;  %v4866_v36 = vsub.f32 %v4787_v31, %v4865_v33 }
 0x6ce   :  { %12016 = vmatprep.subr.mxu1 %v13015_v46  ;;  %11883 = vmatprep.mubr.msk.f32.mxu0 %vm13016_vm1, %v13015_v46 }
 0x6cf   :  { %12014 = vmatmul.mubr.f32.vlgmr.msra.gmra.mrb[12].mxu1 %v5810_v57  ;;  %11886 = vmatprep.subr.mxu0 %v13015_v46  ;;  %v4867_v38 = vand.u32 4294901760, %v4866_v36 }
 0x6d0   :  { %12017 = vmatpush3.xpose.msra.mxu1 %v5821_v58  ;;  %12018 = vmatprep.mubr.msk.f32.mxu1 %vm13016_vm1, %v13015_v46 }
 0x6d1   :  { %12021 = vmatprep.subr.mxu1 %v13015_v46  ;;  %v4868_v29 = vsub.f32 %v4866_v36, %v4867_v38 }
 0x6d3   :  { %v4869_v42 = vand.u32 4294901760, %v4868_v29 }
 0x6d4   :  { %11884 = vmatmul.mubr.f32.vlgmr.msra.gmra.mrb[6].mxu0 %v13398_v35 }
 0x6d5   :  { %11887 = vmatpush3.msra.mxu0 %v13359_v60  ;;  %11888 = vmatprep.mubr.msk.f32.mxu0 %vm13016_vm1, %v13015_v46  ;;  %v4295_v60 = vand.u32 4294901760, %v11209_v59 }
 0x6d7   :  { %12019 = vmatmul.mubr.f32.vlgmr.msra.gmra.mrb[12].mxu1 %v5806_v47  ;;  %11921 = vmatprep.subr.mxu0 %v4295_v60  ;;  %v4382_v61 = vsub.f32 %v11209_v59, %v4295_v60 }
 0x6d8   :  { %12022 = vmatpush3.xpose.msra.mxu1 %v5818_v52  ;;  %12023 = vmatprep.mubr.msk.f32.mxu1 %vm13016_vm1, %v13015_v46 }
 0x6d9   :  { %12026 = vmatprep.subr.mxu1 %v13015_v46  ;;  %v4383_v62 = vand.u32 4294901760, %v4382_v61 }
 0x6db   :  { %v4384_v63 = vsub.f32 %v4382_v61, %v4383_v62 }
 0x6dc   :  { %11889 = vmatmul.mubr.f32.vlgmr.msra.gmra.mrb[6].mxu0 %v13398_v35  ;;  %v4857_v35 = vand.u32 4294901760, %v4856_v32 }
 0x6dd   :  { %11922 = vmatpush3.msra.mxu0 %v4295_v60  ;;  %v4385_v0 = vand.u32 4294901760, %v4384_v63 }
 0x6de   :  { %v4858_v37 = vsub.f32 %v4856_v32, %v4857_v35 }
 0x6df   :  { %12024 = vmatmul.mubr.f32.vlgmr.msra.gmra.mrb[12].mxu1 %v5807_v49  ;;  %11926 = vmatprep.subr.mxu0 %v4385_v0 }
 0x6e0   :  { %12027 = vmatpush3.xpose.msra.mxu1 %v5741_v48  ;;  %12028 = vmatprep.mubr.msk.f32.mxu1 %vm13016_vm1, %v13015_v46  ;;  %v4859_v41 = vand.u32 4294901760, %v4858_v37 }
 0x6e1   :  { %12031 = vmatprep.subr.mxu1 %v13015_v46 }
 0x6e7   :  { %12029 = vmatmul.mubr.f32.vlgmr.msra.gmra.mrb[12].mxu1 %v5808_v53 }
 0x6e8   :  { %12032 = vmatpush3.xpose.msra.mxu1 %v5819_v54  ;;  %12033 = vmatprep.mubr.msk.f32.mxu1 %vm13016_vm1, %v13015_v46 }
 0x6e9   :  { %12036 = vmatprep.subr.mxu1 %v13015_v46 }
 0x6ef   :  { %12034 = vmatmul.mubr.f32.vlgmr.msra.gmra.mrb[12].mxu1 %v5806_v47 }
 0x6f0   :  { %12037 = vmatpush3.xpose.msra.mxu1 %v5741_v48  ;;  %12038 = vmatprep.mubr.msk.f32.mxu1 %vm13016_vm1, %v13015_v46 }
 0x6f1   :  { %12071 = vmatprep.subr.mxu1 %v13015_v46 }
 0x6f7   :  { %12039 = vmatmul.mubr.f32.vlgmr.msra.gmra.mrb[12].mxu1 %v5806_v47 }
 0x6f8   :  { %12073 = vmatprep.mubr.msk.f32.mxu1 %vm13016_vm1, %v13015_v46 }
 0x772   :  { %v4282_v1 = vpop.f32.mrb[8].mxu1 }
 0x773   :  { %v11920_v2 = vpop.f32.mrb[9].mxu1  ;;  %v4292_v7 = vsel %vm621_vm2, %v4282_v1, 0 }
 0x774   :  { %v4370_v8 = vand.u32 4294901760, %v4292_v7 }
 0x776   :  { %v4371_v9 = vsub.f32 %v4292_v7, %v4370_v8 }
 0x778   :  { %v4372_v14 = vand.u32 4294901760, %v4371_v9 }
 0x77a   :  { %v4373_v18 = vsub.f32 %v4371_v9, %v4372_v14 }
 0x77c   :  { %v4374_v20 = vand.u32 4294901760, %v4373_v18 }
 0x79e   :  { %v5728_v3 = vpop.f32.mrb[10].mxu1 }
 0x79f   :  { %v13461_v4 = vadd.f32 %v13219_v16, %v5728_v3  ;;  %v12010_v5 = vpop.f32.mrb[11].mxu1 }
 0x7a1   :  { %v6186_v6 = vsel %vm621_vm2, %v13461_v4, -inf }
 0x7a2   :  { %6187 = vmax.xlane.f32.xlu1 %v6186_v6 }
 0x7af   :  { %v3830_v10 = vpop.f32.mrb[6].mxu0 }
 0x7b0   :  { %v4289_v11 = vsel %vm621_vm2, %v3830_v10, 0  ;;  %v11890_v12 = vpop.f32.mrb[7].mxu0 }
 0x7b1   :  { %v4360_v13 = vand.u32 4294901760, %v4289_v11 }
 0x7b3   :  { %v4361_v15 = vsub.f32 %v4289_v11, %v4360_v13 }
 0x7b5   :  { %v4362_v17 = vand.u32 4294901760, %v4361_v15 }
 0x7b7   :  { %v4363_v16 = vsub.f32 %v4361_v15, %v4362_v17 }
 0x7b9   :  { %v4364_v19 = vand.u32 4294901760, %v4363_v16 }
 0x7bb   :  { %11923 = vmatprep.mubr.f32.mxu0 %v4364_v19 }
 0x7bc   :  { %11924 = vmatmul.mubr.f32.vlgmr.msra.gmra.mrb[8].mxu0 %v4374_v20 }
 0x7bd   :  { %11928 = vmatprep.mubr.f32.mxu0 %v4360_v13  ;;  %11927 = vmatpush3.msra.mxu0 %v4385_v0 }
 0x7be   :  { %11931 = vmatprep.subr.mxu0 %v4382_v61 }
 0x7c4   :  { %11929 = vmatmul.mubr.f32.vlgmr.msra.gmra.mrb[8].mxu0 %v4370_v8 }
 0x7c5   :  { %11933 = vmatprep.mubr.f32.mxu0 %v4361_v15  ;;  %11932 = vmatpush3.msra.mxu0 %v4382_v61 }
 0x7c6   :  { %11936 = vmatprep.subr.mxu0 %v4295_v60 }
 0x7ca   :  { %v6182_v22 = vpop.f32.mrb[12].mxu1 }
 0x7cb   :  { %v13468_v23 = vadd.f32 %v13230_v21, %v6182_v22  ;;  %v12040_v24 = vpop.f32.mrb[13].mxu1  ;;  %v4877_v21 = vsub.f32 %v2451_v26, %v4790_v28 }
 0x7cc   :  { %11934 = vmatmul.mubr.f32.vlgmr.msra.gmra.mrb[8].mxu0 %v4371_v9 }
 0x7cd   :  { %11938 = vmatprep.mubr.f32.mxu0 %v4362_v17  ;;  %v6189_v25 = vsel %vm621_vm2, %v13468_v23, -inf  ;;  %11937 = vmatpush3.msra.mxu0 %v4295_v60  ;;  %v4878_v34 = vand.u32 4294901760, %v4877_v21 }
 0x7ce   :  { %6190 = vmax.xlane.f32.xlu1 %v6189_v25  ;;  %11941 = vmatprep.subr.mxu0 %v4383_v62 }
 0x7cf   :  { %v4879_v39 = vsub.f32 %v4877_v21, %v4878_v34 }
 0x7d1   :  { %v4880_v40 = vand.u32 4294901760, %v4879_v39  ;;  %v11210_v39 = vld [vmem:[%s13802_s4 + $0x10] sm:$0xff] }
 0x7d2   :  { %v7121_v37 = vand.u32 4294901760, %v11210_v39 }
 0x7d4   :  { %11939 = vmatmul.mubr.f32.vlgmr.msra.gmra.mrb[8].mxu0 %v4372_v14 }
 0x7d5   :  { %11943 = vmatprep.mubr.f32.mxu0 %v4360_v13  ;;  %11942 = vmatpush3.msra.mxu0 %v4383_v62 }
 0x7d6   :  { %11946 = vmatprep.subr.mxu0 %v4295_v60 }
 0x7dc   :  { %11944 = vmatmul.mubr.f32.vlgmr.msra.gmra.mrb[8].mxu0 %v4370_v8 }
 0x7dd   :  { %11948 = vmatprep.mubr.f32.mxu0 %v4360_v13  ;;  %11947 = vmatpush3.msra.mxu0 %v4295_v60 }
 0x7de   :  { %11951 = vmatprep.subr.mxu0 %v4790_v28 }
 0x7df   :  { %6208 = vrot.lane.b32.xlu1 %v13160_v50, %s13024_s24 }
 0x7e4   :  { %11949 = vmatmul.mubr.f32.vlgmr.msra.gmra.mrb[8].mxu0 %v4370_v8 }
 0x7e5   :  { %11953 = vmatprep.mubr.f32.mxu0 %v4859_v41  ;;  %11952 = vmatpush3.msra.mxu0 %v4790_v28 }
 0x7e6   :  { %11956 = vmatprep.subr.mxu0 %v4880_v40 }
 0x7ec   :  { %11954 = vmatmul.mubr.f32.vlgmr.msra.gmra.mrb[8].mxu0 %v4869_v42 }
 0x7ed   :  { %11958 = vmatprep.mubr.f32.mxu0 %v4855_v30  ;;  %11957 = vmatpush3.msra.mxu0 %v4880_v40 }
 0x7ee   :  { %11961 = vmatprep.subr.mxu0 %v4877_v21 }
 0x7f4   :  { %11959 = vmatmul.mubr.f32.vlgmr.msra.gmra.mrb[8].mxu0 %v4865_v33 }
 0x7f5   :  { %11963 = vmatprep.mubr.f32.mxu0 %v4856_v32  ;;  %11962 = vmatpush3.msra.mxu0 %v4877_v21 }
 0x7f6   :  { %11966 = vmatprep.subr.mxu0 %v4790_v28 }
 0x7fc   :  { %11964 = vmatmul.mubr.f32.vlgmr.msra.gmra.mrb[8].mxu0 %v4866_v36 }
 0x7fd   :  { %11968 = vmatprep.mubr.f32.mxu0 %v4857_v35  ;;  %11967 = vmatpush3.msra.mxu0 %v4790_v28 }
 0x7fe   :  { %11971 = vmatprep.subr.mxu0 %v4878_v34 }
 0x804   :  { %11969 = vmatmul.mubr.f32.vlgmr.msra.gmra.mrb[8].mxu0 %v4867_v38  ;;  %v7208_v38 = vsub.f32 %v11210_v39, %v7121_v37 }
 0x805   :  { %11973 = vmatprep.mubr.f32.mxu0 %v4855_v30  ;;  %11972 = vmatpush3.msra.mxu0 %v4878_v34 }
 0x806   :  { %11976 = vmatprep.subr.mxu0 %v4790_v28  ;;  %v7209_v40 = vand.u32 4294901760, %v7208_v38 }
 0x808   :  { %v7210_v41 = vsub.f32 %v7208_v38, %v7209_v40 }
 0x80a   :  { %v7211_v29 = vand.u32 4294901760, %v7210_v41 }
 0x80c   :  { %11974 = vmatmul.mubr.f32.vlgmr.msra.gmra.mrb[8].mxu0 %v4865_v33 }
 0x80d   :  { %11978 = vmatprep.mubr.f32.mxu0 %v4855_v30  ;;  %11977 = vmatpush3.msra.mxu0 %v4790_v28 }
 0x80e   :  { %12041 = vmatprep.subr.mxu0 %v13015_v46 }
 0x814   :  { %11979 = vmatmul.mubr.f32.vlgmr.msra.gmra.mrb[8].mxu0 %v4865_v33 }
 0x815   :  { %12043 = vmatprep.mubr.msk.f32.mxu0 %vm13016_vm1, %v13015_v46 }
 0x82f   :  { %v6188_v43 = vpop.xlane.xlu1 %6187 }
 0x830   :  { %v6192_v44 = vsub.f32 %v13461_v4, %v6188_v43 }
 0x832   :  { %v6194_v45 = vmul.f32 1.442695, %v6192_v44 }
 0x834   :  { %12936 = vpow2.f32 %v6194_v45 }
 0x83e   :  { %v12937_v47 = vpop.eup %12936 }
 0x83f   :  { %v6198_v48 = vsel %vm621_vm2, %v12937_v47, 0.0 }
 0x840   :  { %6199 = vadd.xlane.f32.xlu0 %v6198_v48 }
 0x856   :  { %7613 = vrot.lane.b32.xlu0 %v13160_v50, %s13025_s25 }
 0x85b   :  { %v6191_v49 = vpop.xlane.xlu1 %6190 }
 0x85c   :  { %v6193_v52 = vsub.f32 %v13468_v23, %v6191_v49 }
 0x85e   :  { %v6196_v53 = vmul.f32 1.442695, %v6193_v52 }
 0x85f   :  { %v6209_v54 = vpop.permute.xlu1 %6208 }
 0x860   :  { %12938 = vpow2.f32 %v6196_v53  ;;  %v6215_v55 = vand.u32 4294901760, %v6209_v54 }
 0x862   :  { %12042 = vmatpush3.msra.mxu0 %v6215_v55  ;;  %v6292_v60 = vsub.f32 %v6209_v54, %v6215_v55 }
 0x863   :  { %12046 = vmatprep.subr.mxu0 %v13015_v46 }
 0x864   :  { %v6293_v0 = vand.u32 4294901760, %v6292_v60 }
 0x866   :  { %v6294_v3 = vsub.f32 %v6292_v60, %v6293_v0 }
 0x868   :  { %v6295_v6 = vand.u32 4294901760, %v6294_v3 }
 0x86a   :  { %v12939_v56 = vpop.eup %12938 }
 0x86b   :  { %v6201_v57 = vsel %vm621_vm2, %v12939_v56, 0.0 }
 0x86c   :  { %6202 = vadd.xlane.f32.xlu1 %v6201_v57 }
 0x87d   :  { %6660 = vrot.lane.b32.xlu1 %v13163_v51, %s13024_s24 }
 0x881   :  { %7611 = vrot.lane.b32.xlu1 %v13160_v50, %s13026_s0 }
 0x885   :  { %8065 = vrot.lane.b32.xlu1 %v13163_v51, %s13026_s0 }
 0x889   :  { %8067 = vrot.lane.b32.xlu1 %v13163_v51, %s13025_s25  ;;  %s13028_s25 = smov [#allocation5]  }
 0x88a   :  { %s11194_s0 = sshll.u32 %s13028_s25, 4  ;;  %s11195_s0 = int_to_ptr.vmem [resolvable:$true] %s11194_s0 }
 0x88b   :  { %s12986_s2 = scalar_lea.vmem %s11195_s0, 256  ;;  %p12991_p9 = scmp.lt.s32.totalorder %s11195_s0, %s11195_s0 }
 0x88c   :  { %p12987_p8 = scmp.ne.s32.totalorder %s11195_s0, %s12986_s2  ;;  %p12992_p10 = scmp.lt.s32.totalorder %s12986_s2, %s12986_s2 }
 0x88e   :  { %p12993_p11 = por %p12992_p10, %p12991_p9 }
 0x890   :  { %p12994_p12 = pnand %p12993_p11, %p12987_p8 }
 0x8cd   :  { %v6200_v58 = vpop.xlane.xlu0 %6199 }
 0x8ce   :  { %12940 = vrcp.f32 %v6200_v58 }
 0x8d1   :  { %v7614_v24 = vpop.permute.xlu0 %7613 }
 0x8d2   :  { %v7617_v26 = vsel %vm621_vm2, %v7614_v24, 0 }
 0x8d3   :  { %v7620_v28 = vand.u32 4294901760, %v7617_v26 }
 0x8d5   :  { %v7697_v21 = vsub.f32 %v7617_v26, %v7620_v28 }
 0x8d7   :  { %v7698_v32 = vand.u32 4294901760, %v7697_v21 }
 0x8d8   :  { %v12941_v59 = vpop.eup %12940 }
 0x8d9   :  { %v6206_v61 = vmul.f32 %v12941_v59, %v12937_v47  ;;  %v7699_v34 = vsub.f32 %v7697_v21, %v7698_v32 }
 0x8db   :  { %v6212_v62 = vsel %vm621_vm2, %v6206_v61, 0  ;;  %v7700_v36 = vand.u32 4294901760, %v7699_v34 }
 0x8dc   :  { %v6280_v63 = vand.u32 4294901760, %v6212_v62 }
 0x8de   :  { %v6281_v1 = vsub.f32 %v6212_v62, %v6280_v63 }
 0x8e0   :  { %v6282_v2 = vand.u32 4294901760, %v6281_v1 }
 0x8e2   :  { %v6283_v4 = vsub.f32 %v6281_v1, %v6282_v2 }
 0x8e4   :  { %v6284_v5 = vand.u32 4294901760, %v6283_v4 }
 0x8e6   :  { %12044 = vmatmul.mubr.f32.vlgmr.msra.gmra.mrb[10].mxu0 %v6284_v5 }
 0x8e7   :  { %12047 = vmatpush3.msra.mxu0 %v6295_v6  ;;  %12048 = vmatprep.mubr.msk.f32.mxu0 %vm13016_vm1, %v13015_v46  ;;  %v12960_v6 = vld [vmem:[%s13799_s1] ss:$0 sm:$0xff] }
 0x8e8   :  { %12051 = vmatprep.subr.mxu0 %v13015_v46 }
 0x8ee   :  { %12049 = vmatmul.mubr.f32.vlgmr.msra.gmra.mrb[10].mxu0 %v6280_v63 }
 0x8ef   :  { %12052 = vmatpush3.msra.mxu0 %v6292_v60  ;;  %12053 = vmatprep.mubr.msk.f32.mxu0 %vm13016_vm1, %v13015_v46 }
 0x8f0   :  { %12056 = vmatprep.subr.mxu0 %v13015_v46 }
 0x8f6   :  { %12054 = vmatmul.mubr.f32.vlgmr.msra.gmra.mrb[10].mxu0 %v6281_v1 }
 0x8f7   :  { %12057 = vmatpush3.msra.mxu0 %v6215_v55  ;;  %12058 = vmatprep.mubr.msk.f32.mxu0 %vm13016_vm1, %v13015_v46 }
 0x8f8   :  { %12061 = vmatprep.subr.mxu0 %v13015_v46 }
 0x8f9   :  { %v6203_v7 = vpop.xlane.xlu1 %6202 }
 0x8fa   :  { %12942 = vrcp.f32 %v6203_v7 }
 0x8fd   :  { %v6661_v8 = vpop.permute.xlu1 %6660 }
 0x8fe   :  { %v6667_v9 = vand.u32 4294901760, %v6661_v8  ;;  %12059 = vmatmul.mubr.f32.vlgmr.msra.gmra.mrb[10].mxu0 %v6282_v2 }
 0x8ff   :  { %12062 = vmatpush3.msra.mxu0 %v6293_v0  ;;  %12063 = vmatprep.mubr.msk.f32.mxu0 %vm13016_vm1, %v13015_v46 }
 0x900   :  { %12072 = vmatpush3.msra.mxu1 %v6667_v9  ;;  %12066 = vmatprep.subr.mxu0 %v13015_v46  ;;  %v6744_v12 = vsub.f32 %v6661_v8, %v6667_v9 }
 0x901   :  { %12076 = vmatprep.subr.mxu1 %v13015_v46  ;;  %v7612_v23 = vpop.permute.xlu1 %7611 }
 0x902   :  { %v6745_v15 = vand.u32 4294901760, %v6744_v12  ;;  %v7615_v25 = vsel %vm621_vm2, %v7612_v23, 0  ;;  %v12961_v23 = vld [vmem:[%s13799_s1 + $0x1] ss:$0 sm:$0xff] }
 0x903   :  { %v7685_v27 = vand.u32 4294901760, %v7615_v25 }
 0x904   :  { %v12943_v10 = vpop.eup %12942  ;;  %v6746_v16 = vsub.f32 %v6744_v12, %v6745_v15 }
 0x905   :  { %v6207_v11 = vmul.f32 %v12943_v10, %v12939_v56  ;;  %v7686_v30 = vsub.f32 %v7615_v25, %v7685_v27  ;;  %v8066_v61 = vpop.permute.xlu1 %8065 }
 0x906   :  { %12064 = vmatmul.mubr.f32.vlgmr.msra.gmra.mrb[10].mxu0 %v6280_v63  ;;  %v6747_v22 = vand.u32 4294901760, %v6746_v16 }
 0x907   :  { %12067 = vmatpush3.msra.mxu0 %v6215_v55  ;;  %12068 = vmatprep.mubr.msk.f32.mxu0 %vm13016_vm1, %v13015_v46  ;;  %v6664_v13 = vsel %vm621_vm2, %v6207_v11, 0  ;;  %v7687_v31 = vand.u32 4294901760, %v7686_v30 }
 0x908   :  { %v6732_v14 = vand.u32 4294901760, %v6664_v13  ;;  %12101 = vmatprep.subr.mxu0 %v7121_v37 }
 0x909   :  { %v7688_v33 = vsub.f32 %v7686_v30, %v7687_v31  ;;  %v8068_v62 = vpop.permute.xlu1 %8067 }
 0x90a   :  { %v6733_v17 = vsub.f32 %v6664_v13, %v6732_v14  ;;  %v8071_v0 = vsel %vm621_vm2, %v8068_v62, 0  ;;  %v11211_v62 = vld [vmem:[%s13802_s4 + $0x18] sm:$0xff] }
 0x90b   :  { %v7689_v35 = vand.u32 4294901760, %v7688_v33  ;;  %v8074_v2 = vand.u32 4294901760, %v8071_v0 }
 0x90c   :  { %v6734_v18 = vand.u32 4294901760, %v6733_v17 }
 0x90d   :  { %v8151_v4 = vsub.f32 %v8071_v0, %v8074_v2 }
 0x90e   :  { %12069 = vmatmul.mubr.f32.vlgmr.msra.gmra.mrb[10].mxu0 %v6280_v63  ;;  %v6735_v19 = vsub.f32 %v6733_v17, %v6734_v18  ;;  %v8069_v63 = vsel %vm621_vm2, %v8066_v61, 0 }
 0x90f   :  { %12102 = vmatpush3.msra.mxu0 %v7121_v37  ;;  %v8139_v1 = vand.u32 4294901760, %v8069_v63  ;;  %v8152_v10 = vand.u32 4294901760, %v8151_v4 }
 0x910   :  { %v6736_v20 = vand.u32 4294901760, %v6735_v19  ;;  %12106 = vmatprep.subr.mxu0 %v7211_v29 }
 0x911   :  { %v8140_v3 = vsub.f32 %v8069_v63, %v8139_v1  ;;  %v8153_v13 = vsub.f32 %v8151_v4, %v8152_v10  ;;  %v9454_v63 = vand.u32 4294901760, %v11211_v62 }
 0x912   :  { %12074 = vmatmul.mubr.f32.vlgmr.msra.gmra.mrb[14].mxu1 %v6736_v20 }
 0x913   :  { %12077 = vmatpush3.msra.mxu1 %v6747_v22  ;;  %12078 = vmatprep.mubr.msk.f32.mxu1 %vm13016_vm1, %v13015_v46  ;;  %v9541_v0 = vsub.f32 %v11211_v62, %v9454_v63 }
 0x914   :  { %12081 = vmatprep.subr.mxu1 %v13015_v46 }
 0x91a   :  { %12079 = vmatmul.mubr.f32.vlgmr.msra.gmra.mrb[14].mxu1 %v6732_v14 }
 0x91b   :  { %12082 = vmatpush3.msra.mxu1 %v6744_v12  ;;  %12083 = vmatprep.mubr.msk.f32.mxu1 %vm13016_vm1, %v13015_v46 }
 0x91c   :  { %12086 = vmatprep.subr.mxu1 %v13015_v46 }
 0x922   :  { %12084 = vmatmul.mubr.f32.vlgmr.msra.gmra.mrb[14].mxu1 %v6733_v17 }
 0x923   :  { %12087 = vmatpush3.msra.mxu1 %v6667_v9  ;;  %12088 = vmatprep.mubr.msk.f32.mxu1 %vm13016_vm1, %v13015_v46 }
 0x924   :  { %12091 = vmatprep.subr.mxu1 %v13015_v46 }
 0x92a   :  { %12089 = vmatmul.mubr.f32.vlgmr.msra.gmra.mrb[14].mxu1 %v6734_v18 }
 0x92b   :  { %12092 = vmatpush3.msra.mxu1 %v6745_v15  ;;  %12093 = vmatprep.mubr.msk.f32.mxu1 %vm13016_vm1, %v13015_v46  ;;  %v8154_v15 = vand.u32 4294901760, %v8153_v13 }
 0x92c   :  { %12096 = vmatprep.subr.mxu1 %v13015_v46 }
 0x932   :  { %12094 = vmatmul.mubr.f32.vlgmr.msra.gmra.mrb[14].mxu1 %v6732_v14 }
 0x933   :  { %12097 = vmatpush3.msra.mxu1 %v6667_v9  ;;  %12098 = vmatprep.mubr.msk.f32.mxu1 %vm13016_vm1, %v13015_v46  ;;  %v8141_v9 = vand.u32 4294901760, %v8140_v3 }
 0x934   :  { %12131 = vmatprep.subr.mxu1 %v13015_v46 }
 0x935   :  { %v8142_v12 = vsub.f32 %v8140_v3, %v8141_v9 }
 0x93a   :  { %12099 = vmatmul.mubr.f32.vlgmr.msra.gmra.mrb[14].mxu1 %v6732_v14  ;;  %v8143_v14 = vand.u32 4294901760, %v8142_v12 }
 0x93b   :  { %12132 = vmatpush3.xpose.msra.mxu1 %v7620_v28  ;;  %12133 = vmatprep.mubr.msk.f32.mxu1 %vm13016_vm1, %v13015_v46 }
 0x93c   :  { %12136 = vmatprep.subr.mxu1 %v13015_v46 }
 0x93e   :  { %12134 = vmatmul.mubr.f32.vlgmr.msra.gmra.mrb[16].mxu1 %v7689_v35 }
 0x93f   :  { %12137 = vmatpush3.xpose.msra.mxu1 %v7700_v36  ;;  %12138 = vmatprep.mubr.msk.f32.mxu1 %vm13016_vm1, %v13015_v46 }
 0x940   :  { %12141 = vmatprep.subr.mxu1 %v13015_v46 }
 0x946   :  { %12139 = vmatmul.mubr.f32.vlgmr.msra.gmra.mrb[16].mxu1 %v7685_v27 }
 0x947   :  { %12142 = vmatpush3.xpose.msra.mxu1 %v7697_v21  ;;  %12143 = vmatprep.mubr.msk.f32.mxu1 %vm13016_vm1, %v13015_v46 }
 0x948   :  { %12146 = vmatprep.subr.mxu1 %v13015_v46 }
 0x94e   :  { %12144 = vmatmul.mubr.f32.vlgmr.msra.gmra.mrb[16].mxu1 %v7686_v30 }
 0x94f   :  { %12147 = vmatpush3.xpose.msra.mxu1 %v7620_v28  ;;  %12148 = vmatprep.mubr.msk.f32.mxu1 %vm13016_vm1, %v13015_v46 }
 0x950   :  { %12151 = vmatprep.subr.mxu1 %v13015_v46 }
 0x956   :  { %12149 = vmatmul.mubr.f32.vlgmr.msra.gmra.mrb[16].mxu1 %v7687_v31 }
 0x957   :  { %12152 = vmatpush3.xpose.msra.mxu1 %v7698_v32  ;;  %12153 = vmatprep.mubr.msk.f32.mxu1 %vm13016_vm1, %v13015_v46 }
 0x958   :  { %12156 = vmatprep.subr.mxu1 %v13015_v46 }
 0x95e   :  { %12154 = vmatmul.mubr.f32.vlgmr.msra.gmra.mrb[16].mxu1 %v7685_v27 }
 0x95f   :  { %12157 = vmatpush3.xpose.msra.mxu1 %v7620_v28  ;;  %12158 = vmatprep.mubr.msk.f32.mxu1 %vm13016_vm1, %v13015_v46 }
 0x960   :  { %12191 = vmatprep.subr.mxu1 %v13015_v46 }
 0x966   :  { %12159 = vmatmul.mubr.f32.vlgmr.msra.gmra.mrb[16].mxu1 %v7685_v27 }
 0x967   :  { %12193 = vmatprep.mubr.msk.f32.mxu1 %vm13016_vm1, %v13015_v46 }
 0x9e1   :  { %v6656_v42 = vpop.f32.mrb[10].mxu0 }
 0x9e2   :  { %v7115_v43 = vsel %vm621_vm2, %v6656_v42, 0  ;;  %v12070_v44 = vpop.f32.mrb[11].mxu0 }
 0x9e3   :  { %v7186_v45 = vand.u32 4294901760, %v7115_v43 }
 0x9e5   :  { %v7187_v47 = vsub.f32 %v7115_v43, %v7186_v45 }
 0x9e7   :  { %v7188_v48 = vand.u32 4294901760, %v7187_v47 }
 0x9e9   :  { %v7189_v49 = vsub.f32 %v7187_v47, %v7188_v48 }
 0x9eb   :  { %v7190_v52 = vand.u32 4294901760, %v7189_v49 }
 0x9ed   :  { %12103 = vmatprep.mubr.f32.mxu0 %v7190_v52 }
 0xa0d   :  { %v7108_v53 = vpop.f32.mrb[14].mxu1 }
 0xa0e   :  { %v7118_v54 = vsel %vm621_vm2, %v7108_v53, 0  ;;  %v12100_v55 = vpop.f32.mrb[15].mxu1 }
 0xa0f   :  { %v7196_v56 = vand.u32 4294901760, %v7118_v54 }
 0xa11   :  { %v7197_v57 = vsub.f32 %v7118_v54, %v7196_v56 }
 0xa13   :  { %v7198_v58 = vand.u32 4294901760, %v7197_v57 }
 0xa15   :  { %v7199_v59 = vsub.f32 %v7197_v57, %v7198_v58 }
 0xa17   :  { %v7200_v60 = vand.u32 4294901760, %v7199_v59 }
 0xa19   :  { %12104 = vmatmul.mubr.f32.vlgmr.msra.gmra.mrb[8].mxu0 %v7200_v60 }
 0xa1a   :  { %12108 = vmatprep.mubr.f32.mxu0 %v7186_v45  ;;  %12107 = vmatpush3.msra.mxu0 %v7211_v29 }
 0xa1b   :  { %12111 = vmatprep.subr.mxu0 %v7208_v38 }
 0xa21   :  { %12109 = vmatmul.mubr.f32.vlgmr.msra.gmra.mrb[8].mxu0 %v7196_v56 }
 0xa22   :  { %12113 = vmatprep.mubr.f32.mxu0 %v7187_v47  ;;  %12112 = vmatpush3.msra.mxu0 %v7208_v38 }
 0xa23   :  { %12116 = vmatprep.subr.mxu0 %v7121_v37 }
 0xa29   :  { %12114 = vmatmul.mubr.f32.vlgmr.msra.gmra.mrb[8].mxu0 %v7197_v57 }
 0xa2a   :  { %12118 = vmatprep.mubr.f32.mxu0 %v7188_v48  ;;  %12117 = vmatpush3.msra.mxu0 %v7121_v37 }
 0xa2b   :  { %12121 = vmatprep.subr.mxu0 %v7209_v40 }
 0xa31   :  { %12119 = vmatmul.mubr.f32.vlgmr.msra.gmra.mrb[8].mxu0 %v7198_v58 }
 0xa32   :  { %12123 = vmatprep.mubr.f32.mxu0 %v7186_v45  ;;  %12122 = vmatpush3.msra.mxu0 %v7209_v40 }
 0xa33   :  { %12126 = vmatprep.subr.mxu0 %v7121_v37 }
 0xa39   :  { %12124 = vmatmul.mubr.f32.vlgmr.msra.gmra.mrb[8].mxu0 %v7196_v56  ;;  %v8061_v5 = vpop.f32.mrb[16].mxu1 }
 0xa3a   :  { %v12661_v7 = vadd.f32 %v12960_v6, %v8061_v5  ;;  %12127 = vmatpush3.msra.mxu0 %v7121_v37  ;;  %12128 = vmatprep.mubr.f32.mxu0 %v7186_v45  ;;  %v12160_v8 = vpop.f32.mrb[17].mxu1 }
 0xa3b   :  { %12161 = vmatprep.subr.mxu0 %v13015_v46 }
 0xa3c   :  { %v8519_v11 = vsel %vm621_vm2, %v12661_v7, -inf }
 0xa3d   :  { %8520 = vmax.xlane.f32.xlu1 %v8519_v11 }
 0xa41   :  { %12129 = vmatmul.mubr.f32.vlgmr.msra.gmra.mrb[8].mxu0 %v7196_v56 }
 0xa42   :  { %12162 = vmatpush3.xpose.msra.mxu0 %v8074_v2  ;;  %12163 = vmatprep.mubr.msk.f32.mxu0 %vm13016_vm1, %v13015_v46 }
 0xa43   :  { %12166 = vmatprep.subr.mxu0 %v13015_v46 }
 0xa45   :  { %12164 = vmatmul.mubr.f32.vlgmr.msra.gmra.mrb[12].mxu0 %v8143_v14 }
 0xa46   :  { %12167 = vmatpush3.xpose.msra.mxu0 %v8154_v15  ;;  %12168 = vmatprep.mubr.msk.f32.mxu0 %vm13016_vm1, %v13015_v46 }
 0xa47   :  { %12171 = vmatprep.subr.mxu0 %v13015_v46 }
 0xa4d   :  { %12169 = vmatmul.mubr.f32.vlgmr.msra.gmra.mrb[12].mxu0 %v8139_v1 }
 0xa4e   :  { %12172 = vmatpush3.xpose.msra.mxu0 %v8151_v4  ;;  %12173 = vmatprep.mubr.msk.f32.mxu0 %vm13016_vm1, %v13015_v46 }
 0xa4f   :  { %12176 = vmatprep.subr.mxu0 %v13015_v46 }
 0xa55   :  { %12174 = vmatmul.mubr.f32.vlgmr.msra.gmra.mrb[12].mxu0 %v8140_v3 }
 0xa56   :  { %12177 = vmatpush3.xpose.msra.mxu0 %v8074_v2  ;;  %12178 = vmatprep.mubr.msk.f32.mxu0 %vm13016_vm1, %v13015_v46 }
 0xa57   :  { %12181 = vmatprep.subr.mxu0 %v13015_v46 }
 0xa5d   :  { %12179 = vmatmul.mubr.f32.vlgmr.msra.gmra.mrb[12].mxu0 %v8141_v9 }
 0xa5e   :  { %12182 = vmatpush3.xpose.msra.mxu0 %v8152_v10  ;;  %12183 = vmatprep.mubr.msk.f32.mxu0 %vm13016_vm1, %v13015_v46 }
 0xa5f   :  { %12186 = vmatprep.subr.mxu0 %v13015_v46 }
 0xa65   :  { %12184 = vmatmul.mubr.f32.vlgmr.msra.gmra.mrb[12].mxu0 %v8139_v1 }
 0xa66   :  { %12187 = vmatpush3.xpose.msra.mxu0 %v8074_v2  ;;  %12188 = vmatprep.mubr.msk.f32.mxu0 %vm13016_vm1, %v13015_v46 }
 0xa67   :  { %12221 = vmatprep.subr.mxu0 %v13015_v46 }
 0xa6d   :  { %12189 = vmatmul.mubr.f32.vlgmr.msra.gmra.mrb[12].mxu0 %v8139_v1  ;;  %v9542_v1 = vand.u32 4294901760, %v9541_v0 }
 0xa6e   :  { %12223 = vmatprep.mubr.msk.f32.mxu0 %vm13016_vm1, %v13015_v46 }
 0xa6f   :  { %v9543_v2 = vsub.f32 %v9541_v0, %v9542_v1 }
 0xa71   :  { %v9544_v3 = vand.u32 4294901760, %v9543_v2 }
 0xaca   :  { %v8521_v17 = vpop.xlane.xlu1 %8520 }
 0xacb   :  { %v8525_v18 = vsub.f32 %v12661_v7, %v8521_v17 }
 0xacd   :  { %v8527_v16 = vmul.f32 1.442695, %v8525_v18 }
 0xacf   :  { %12944 = vpow2.f32 %v8527_v16 }
 0xad9   :  { %v12945_v19 = vpop.eup %12944 }
 0xada   :  { %v8531_v20 = vsel %vm621_vm2, %v12945_v19, 0.0 }
 0xadb   :  { %8532 = vadd.xlane.f32.xlu1 %v8531_v20 }
 0xb40   :  { %v8515_v22 = vpop.f32.mrb[12].mxu0 }
 0xb41   :  { %v12662_v24 = vadd.f32 %v12961_v23, %v8515_v22  ;;  %v12190_v25 = vpop.f32.mrb[13].mxu0 }
 0xb42   :  { %v12962_v25 = vld [vmem:[#allocation2 + $0x8] sm:$0xff] }
 0xb43   :  { %v8522_v26 = vsel %vm621_vm2, %v12662_v24, -inf }
 0xb44   :  { %8523 = vmax.xlane.f32.xlu0 %v8522_v26 }
 0xb5a   :  { %8993 = vrot.lane.b32.xlu0 %v13163_v51, %s13027_s29 }
 0xb68   :  { %v8533_v34 = vpop.xlane.xlu1 %8532 }
 0xbd1   :  { %v8524_v27 = vpop.xlane.xlu0 %8523 }
 0xbd2   :  { %v8526_v28 = vsub.f32 %v12662_v24, %v8524_v27  ;;  %v12963_v27 = vld [vmem:[#allocation2] sm:$0xff] }
 0xbd4   :  { %v8529_v30 = vmul.f32 1.442695, %v8526_v28 }
 0xbd5   :  { %v8994_v21 = vpop.permute.xlu0 %8993 }
 0xbd6   :  { %12946 = vpow2.f32 %v8529_v30  ;;  %v13587_v31 = vand.u32 4294901760, %v8994_v21 }
 0xbd7   :  { %12948 = vrcp.f32 %v8533_v34 }
 0xbd8   :  { %12222 = vmatpush3.msra.mxu0 %v13587_v31  ;;  %v9077_v48 = vsub.f32 %v8994_v21, %v13587_v31 }
 0xbd9   :  { %12226 = vmatprep.subr.mxu0 %v13015_v46 }
 0xbda   :  { %v9078_v55 = vand.u32 4294901760, %v9077_v48 }
 0xbdc   :  { %v9079_v58 = vsub.f32 %v9077_v48, %v9078_v55 }
 0xbde   :  { %v9080_v61 = vand.u32 4294901760, %v9079_v58 }
 0xbe0   :  { %v12947_v32 = vpop.eup %12946 }
 0xbe1   :  { %v8534_v33 = vsel %vm621_vm2, %v12947_v32, 0.0  ;;  %v12949_v51 = vpop.eup %12948 }
 0xbe2   :  { %8535 = vadd.xlane.f32.xlu1 %v8534_v33  ;;  %v8539_v35 = vmul.f32 %v12949_v51, %v12945_v19  ;;  %v11212_v19 = vld [vmem:[%s13803_s5] ss:$0 sm:$0xff] }
 0xbe4   :  { %v8545_v36 = vsel %vm621_vm2, %v8539_v35, 0 }
 0xbe5   :  { %v8613_v39 = vand.u32 4294901760, %v8545_v36 }
 0xbe7   :  { %v8614_v37 = vsub.f32 %v8545_v36, %v8613_v39 }
 0xbe9   :  { %v8615_v38 = vand.u32 4294901760, %v8614_v37 }
 0xbeb   :  { %v8616_v41 = vsub.f32 %v8614_v37, %v8615_v38 }
 0xbed   :  { %v8617_v43 = vand.u32 4294901760, %v8616_v41  ;;  %v9997_v41 = vld [vmem:[%s13804_s6 + $0x8] sm:$0xff] }
 0xbf3   :  { %8541 = vrot.lane.b32.xlu1 %v13160_v50, %s13027_s29 }
 0xc6f   :  { %v8536_v40 = vpop.xlane.xlu1 %8535 }
 0xc70   :  { %12950 = vrcp.f32 %v8536_v40  ;;  %v9996_v40 = vld [vmem:[%s13804_s6] sm:$0xff] }
 0xc73   :  { %v8542_v29 = vpop.permute.xlu1 %8541 }
 0xc74   :  { %v8548_v42 = vand.u32 4294901760, %v8542_v29 }
 0xc76   :  { %v8625_v44 = vsub.f32 %v8542_v29, %v8548_v42  ;;  %12192 = vmatpush3.msra.mxu1 %v8548_v42  ;;  %v9998_v29 = vld [vmem:[%s13804_s6 + $0x10] sm:$0xff] }
 0xc77   :  { %12194 = vmatmul.mubr.f32.vlgmr.msra.gmra.mrb[18].mxu1 %v8617_v43  ;;  %12196 = vmatprep.subr.mxu1 %v13015_v46  ;;  %v10017_v43 = vand.u32 4294901760, %v9997_v41 }
 0xc78   :  { %v8626_v50 = vand.u32 4294901760, %v8625_v44  ;;  %12198 = vmatprep.mubr.msk.f32.mxu1 %vm13016_vm1, %v13015_v46 }
 0xc7a   :  { %v12951_v45 = vpop.eup %12950  ;;  %v8627_v47 = vsub.f32 %v8625_v44, %v8626_v50 }
 0xc7b   :  { %v8540_v49 = vmul.f32 %v12951_v45, %v12947_v32 }
 0xc7c   :  { %v8628_v52 = vand.u32 4294901760, %v8627_v47 }
 0xc7d   :  { %v8997_v53 = vsel %vm621_vm2, %v8540_v49, 0 }
 0xc7e   :  { %12197 = vmatpush3.msra.mxu1 %v8628_v52  ;;  %v9065_v54 = vand.u32 4294901760, %v8997_v53  ;;  %v10111_v52 = vsub.f32 %v9997_v41, %v10017_v43  ;;  %v10545_v41 = vld [vmem:[%s13806_s8 + $0x10] sm:$0xff] }
 0xc7f   :  { %12199 = vmatmul.mubr.f32.vlgmr.msra.gmra.mrb[18].mxu1 %v8613_v39  ;;  %12201 = vmatprep.subr.mxu1 %v13015_v46 }
 0xc80   :  { %12202 = vmatpush3.msra.mxu1 %v8625_v44  ;;  %12203 = vmatprep.mubr.msk.f32.mxu1 %vm13016_vm1, %v13015_v46  ;;  %v9066_v56 = vsub.f32 %v8997_v53, %v9065_v54  ;;  %v9999_v44 = vld [vmem:[%s13804_s6 + $0x18] sm:$0xff] }
 0xc81   :  { %12206 = vmatprep.subr.mxu1 %v13015_v46  ;;  %v10023_v45 = vand.u32 4294901760, %v9999_v44 }
 0xc82   :  { %v9067_v57 = vand.u32 4294901760, %v9066_v56 }
 0xc83   :  { %v10125_v58 = vsub.f32 %v9999_v44, %v10023_v45 }
 0xc84   :  { %v9068_v59 = vsub.f32 %v9066_v56, %v9067_v57 }
 0xc85   :  { %v10126_v62 = vand.u32 4294901760, %v10125_v58 }
 0xc86   :  { %v9069_v60 = vand.u32 4294901760, %v9068_v59 }
 0xc87   :  { %12204 = vmatmul.mubr.f32.vlgmr.msra.gmra.mrb[18].mxu1 %v8614_v37 }
 0xc88   :  { %12207 = vmatpush3.msra.mxu1 %v8548_v42  ;;  %12224 = vmatmul.mubr.f32.vlgmr.msra.gmra.mrb[14].mxu0 %v9069_v60 }
 0xc89   :  { %12227 = vmatpush3.msra.mxu0 %v9080_v61  ;;  %12208 = vmatprep.mubr.msk.f32.mxu1 %vm13016_vm1, %v13015_v46 }
 0xc8a   :  { %12211 = vmatprep.subr.mxu1 %v13015_v46  ;;  %12228 = vmatprep.mubr.msk.f32.mxu0 %vm13016_vm1, %v13015_v46 }
 0xc8b   :  { %12231 = vmatprep.subr.mxu0 %v13015_v46 }
 0xc8f   :  { %12209 = vmatmul.mubr.f32.vlgmr.msra.gmra.mrb[18].mxu1 %v8615_v38 }
 0xc90   :  { %12212 = vmatpush3.msra.mxu1 %v8626_v50  ;;  %12229 = vmatmul.mubr.f32.vlgmr.msra.gmra.mrb[14].mxu0 %v9065_v54  ;;  %v10020_v50 = vand.u32 4294901760, %v9998_v29 }
 0xc91   :  { %12232 = vmatpush3.msra.mxu0 %v9077_v48  ;;  %12213 = vmatprep.mubr.msk.f32.mxu1 %vm13016_vm1, %v13015_v46 }
 0xc92   :  { %12216 = vmatprep.subr.mxu1 %v13015_v46  ;;  %12233 = vmatprep.mubr.msk.f32.mxu0 %vm13016_vm1, %v13015_v46  ;;  %v13661_v48 = vpack.c.bf16 %v10023_v45, %v10020_v50  ;;  %v10548_v45 = vld [vmem:[%s13806_s8 + $0x28] sm:$0xff] }
 0xc93   :  { %12236 = vmatprep.subr.mxu0 %v13015_v46 }
 0xc97   :  { %12214 = vmatmul.mubr.f32.vlgmr.msra.gmra.mrb[18].mxu1 %v8613_v39 }
 0xc98   :  { %12217 = vmatpush3.msra.mxu1 %v8548_v42  ;;  %12234 = vmatmul.mubr.f32.vlgmr.msra.gmra.mrb[14].mxu0 %v9066_v56  ;;  %v10014_v42 = vand.u32 4294901760, %v9996_v40 }
 0xc99   :  { %12237 = vmatpush3.msra.mxu0 %v13587_v31  ;;  %12218 = vmatprep.mubr.msk.f32.mxu1 %vm13016_vm1, %v13015_v46 }
 0xc9a   :  { %12238 = vmatprep.mubr.msk.f32.mxu0 %vm13016_vm1, %v13015_v46  ;;  %12241 = vmatprep.subr.mxu0 %v13015_v46  ;;  %v13659_v47 = vpack.c.bf16 %v10017_v43, %v10014_v42  ;;  %v10104_v49 = vsub.f32 %v9996_v40, %v10014_v42  ;;  %v10572_v42 = vand.u32 4294901760, %v10545_v41 }
 0xc9c   :  { %12510 = vmatprep.subr.bf16.mxu1 %v13659_v47  ;;  %v10105_v53 = vand.u32 4294901760, %v10104_v49 }
 0xc9f   :  { %12219 = vmatmul.mubr.f32.vlgmr.msra.gmra.mrb[18].mxu1 %v8613_v39 }
 0xca0   :  { %12239 = vmatmul.mubr.f32.vlgmr.msra.gmra.mrb[14].mxu0 %v9067_v57  ;;  %12512 = vmatpush3.bf16.msra.mxu1 %v13659_v47  ;;  %v10118_v57 = vsub.f32 %v9998_v29, %v10020_v50  ;;  %v10546_v29 = vld [vmem:[%s13806_s8 + $0x18] sm:$0xff]  ;;  %v10547_v50 = vld [vmem:[%s13806_s8 + $0x20] sm:$0xff] }
 0xca1   :  { %12242 = vmatpush3.msra.mxu0 %v9078_v55  ;;  %12243 = vmatprep.mubr.msk.f32.mxu0 %vm13016_vm1, %v13015_v46  ;;  %v10106_v55 = vsub.f32 %v10104_v49, %v10105_v53  ;;  %v10575_v43 = vand.u32 4294901760, %v10546_v29 }
 0xca2   :  { %12246 = vmatprep.subr.mxu0 %v13015_v46  ;;  %12514 = vmatprep.subr.bf16.mxu1 %v13661_v48  ;;  %v10119_v61 = vand.u32 4294901760, %v10118_v57 }
 0xca3   :  { %v10107_v59 = vand.u32 4294901760, %v10106_v55  ;;  %v13719_v44 = vpack.c.bf16 %v10575_v43, %v10572_v42 }
 0xca4   :  { %12516 = vmatpush3.bf16.msra.mxu1 %v13661_v48 }
 0xca8   :  { %12244 = vmatmul.mubr.f32.vlgmr.msra.gmra.mrb[14].mxu0 %v9065_v54 }
 0xca9   :  { %12247 = vmatpush3.msra.mxu0 %v13587_v31  ;;  %12248 = vmatprep.mubr.msk.f32.mxu0 %vm13016_vm1, %v13015_v46 }
 0xcaa   :  { %12251 = vmatprep.subr.mxu0 %v9454_v63 }
 0xcb0   :  { %12249 = vmatmul.mubr.f32.vlgmr.msra.gmra.mrb[14].mxu0 %v9065_v54  ;;  %v10112_v54 = vand.u32 4294901760, %v10111_v52 }
 0xcb1   :  { %12252 = vmatpush3.msra.mxu0 %v9454_v63 }
 0xcb2   :  { %12256 = vmatprep.subr.mxu0 %v9544_v3  ;;  %v10113_v56 = vsub.f32 %v10111_v52, %v10112_v54 }
 0xcb4   :  { %v10114_v60 = vand.u32 4294901760, %v10113_v56 }
 0xd72   :  { %v8989_v4 = vpop.f32.mrb[18].mxu1 }
 0xd73   :  { %v9448_v5 = vsel %vm621_vm2, %v8989_v4, 0  ;;  %v12220_v6 = vpop.f32.mrb[19].mxu1 }
 0xd74   :  { %v9519_v7 = vand.u32 4294901760, %v9448_v5  ;;  %v12529_v6 = vpack.c.bf16 %v10125_v58, %v10118_v57 }
 0xd76   :  { %v9520_v8 = vsub.f32 %v9448_v5, %v9519_v7  ;;  %v12525_v5 = vpack.c.bf16 %v10111_v52, %v10104_v49  ;;  %v10549_v52 = vld [vmem:[%s13806_s8 + $0x30] sm:$0xff] }
 0xd78   :  { %v9521_v46 = vand.u32 4294901760, %v9520_v8 }
 0xd7a   :  { %v9522_v9 = vsub.f32 %v9520_v8, %v9521_v46 }
 0xd7c   :  { %v9523_v10 = vand.u32 4294901760, %v9522_v9  ;;  %v13675_v9 = vld [vmem:[%s13806_s8 + $0x8] sm:$0xff] }
 0xd7e   :  { %12253 = vmatprep.mubr.f32.mxu0 %v9523_v10 }
 0xd83   :  { %v9441_v11 = vpop.f32.mrb[14].mxu0 }
 0xd84   :  { %v9451_v12 = vsel %vm621_vm2, %v9441_v11, 0  ;;  %v12250_v13 = vpop.f32.mrb[15].mxu0  ;;  %v10569_v11 = vand.u32 4294901760, %v13675_v9 }
 0xd85   :  { %v9529_v14 = vand.u32 4294901760, %v9451_v12 }
 0xd87   :  { %v9530_v15 = vsub.f32 %v9451_v12, %v9529_v14 }
 0xd89   :  { %v9531_v17 = vand.u32 4294901760, %v9530_v15 }
 0xd8b   :  { %v9532_v18 = vsub.f32 %v9530_v15, %v9531_v17 }
 0xd8d   :  { %v9533_v16 = vand.u32 4294901760, %v9532_v18 }
 0xd8f   :  { %12254 = vmatmul.mubr.f32.vlgmr.msra.gmra.mrb[8].mxu0 %v9533_v16 }
 0xd90   :  { %12258 = vmatprep.mubr.f32.mxu0 %v9519_v7  ;;  %12257 = vmatpush3.msra.mxu0 %v9544_v3 }
 0xd91   :  { %12261 = vmatprep.subr.mxu0 %v9541_v0 }
 0xd97   :  { %12259 = vmatmul.mubr.f32.vlgmr.msra.gmra.mrb[8].mxu0 %v9529_v14 }
 0xd98   :  { %12263 = vmatprep.mubr.f32.mxu0 %v9520_v8  ;;  %12262 = vmatpush3.msra.mxu0 %v9541_v0  ;;  %v10120_v0 = vsub.f32 %v10118_v57, %v10119_v61  ;;  %v12545_v8 = vpack.c.bf16 %v10126_v62, %v10119_v61 }
 0xd99   :  { %12266 = vmatprep.subr.mxu0 %v9454_v63 }
 0xd9a   :  { %v10121_v2 = vand.u32 4294901760, %v10120_v0  ;;  %v10674_v0 = vsub.f32 %v10545_v41, %v10572_v42 }
 0xd9f   :  { %12264 = vmatmul.mubr.f32.vlgmr.msra.gmra.mrb[8].mxu0 %v9530_v15 }
 0xda0   :  { %12268 = vmatprep.mubr.f32.mxu0 %v9521_v46  ;;  %12267 = vmatpush3.msra.mxu0 %v9454_v63  ;;  %v13670_v46 = vld [vmem:[%s13806_s8] sm:$0xff] }
 0xda1   :  { %12271 = vmatprep.subr.mxu0 %v9542_v1  ;;  %v10566_v10 = vand.u32 4294901760, %v13670_v46 }
 0xda3   :  { %v13683_v12 = vpack.c.bf16 %v10569_v11, %v10566_v10  ;;  %v10660_v57 = vsub.f32 %v13670_v46, %v10566_v10 }
 0xda7   :  { %12269 = vmatmul.mubr.f32.vlgmr.msra.gmra.mrb[8].mxu0 %v9531_v17 }
 0xda8   :  { %12273 = vmatprep.mubr.f32.mxu0 %v9519_v7  ;;  %12272 = vmatpush3.msra.mxu0 %v9542_v1  ;;  %v10127_v1 = vsub.f32 %v10125_v58, %v10126_v62  ;;  %v10667_v58 = vsub.f32 %v13675_v9, %v10569_v11 }
 0xda9   :  { %12276 = vmatprep.subr.mxu0 %v9454_v63 }
 0xdaa   :  { %v10128_v3 = vand.u32 4294901760, %v10127_v1  ;;  %v10681_v1 = vsub.f32 %v10546_v29, %v10575_v43 }
 0xdac   :  { %v12521_v4 = vpack.c.bf16 %v10128_v3, %v10121_v2 }
 0xdaf   :  { %12274 = vmatmul.mubr.f32.vlgmr.msra.gmra.mrb[8].mxu0 %v9529_v14 }
 0xdb0   :  { %12278 = vmatprep.mubr.f32.mxu0 %v9519_v7  ;;  %12277 = vmatpush3.msra.mxu0 %v9454_v63  ;;  %v12517_v63 = vpack.c.bf16 %v10114_v60, %v10107_v59  ;;  %v12541_v7 = vpack.c.bf16 %v10112_v54, %v10105_v53  ;;  %v10550_v53 = vld [vmem:[%s13806_s8 + $0x38] sm:$0xff]  ;;  %v10584_v54 = vand.u32 4294901760, %v10549_v52  ;;  %v10661_v59 = vand.u32 4294901760, %v10660_v57 }
 0xdb1   :  { %12606 = vmatprep.subr.bf16.mxu0 %v13683_v12  ;;  %v10587_v55 = vand.u32 4294901760, %v10550_v53  ;;  %v10668_v60 = vand.u32 4294901760, %v10667_v58 }
 0xdb2   :  { %12518 = vmatprep.subr.bf16.mxu1 %v12517_v63  ;;  %v10662_v62 = vsub.f32 %v10660_v57, %v10661_v59 }
 0xdb3   :  { %v13743_v56 = vpack.c.bf16 %v10587_v55, %v10584_v54  ;;  %v12621_v61 = vpack.c.bf16 %v10668_v60, %v10661_v59 }
 0xdb4   :  { %v10663_v2 = vand.u32 4294901760, %v10662_v62 }
 0xdb7   :  { %12279 = vmatmul.mubr.f32.vlgmr.msra.gmra.mrb[8].mxu0 %v9529_v14 }
 0xdb8   :  { %12608 = vmatpush3.bf16.msra.mxu0 %v13683_v12 }
 0xdb9   :  { %12610 = vmatprep.subr.bf16.mxu0 %v13719_v44 }
 0xdbc   :  { %12612 = vmatpush3.bf16.msra.mxu0 %v13719_v44 }
 0xe8a   :  { %v12280_v20 = vpop.f32.mrb[8].mxu0 }
 0xe8b   :  { %v9952_v22 = vadd.f32 %v12280_v20, %v11212_v19  ;;  %v9932_v23 = vpop.f32.mrb[9].mxu0  ;;  %v11213_v20 = vld [vmem:[%s13808_s10] ss:$0 sm:$0xff] }
 0xe8c   :  { %v9951_v24 = vadd.f32 %v11212_v19, %v9932_v23 }
 0xe8d   :  { %v9954_v26 = vadd.f32 %v12962_v25, %v9952_v22  ;;  %v11214_v25 = vld [vmem:[%s13809_s11] ss:$0 sm:$0xff] }
 0xe8e   :  { %v9953_v28 = vadd.f32 %v12963_v27, %v9951_v24 }
 0xe8f   :  { %v9958_v30 = vsel %vm69_vm0, %v9954_v26, 0.0 }
 0xe90   :  { %9959 = vadd.xlane.f32.xlu0 %v9958_v30  ;;  %v9955_v21 = vsel %vm69_vm0, %v9953_v28, 0.0 }
 0xe91   :  { %9956 = vadd.xlane.f32.xlu1 %v9955_v21 }
 0xf1d   :  { %v9960_v31 = vpop.xlane.xlu0 %9959 }
 0xf1e   :  { %v9963_v32 = vmul.f32 0.03125, %v9960_v31  ;;  %v9957_v33 = vpop.xlane.xlu1 %9956 }
 0xf1f   :  { %v9962_v34 = vmul.f32 0.03125, %v9957_v33 }
 0xf20   :  { %v13637_v51 = vsub.f32 %v9954_v26, %v9963_v32 }
 0xf21   :  { %v13639_v35 = vsub.f32 %v9953_v28, %v9962_v34 }
 0xf22   :  { %v9967_v36 = vmul.f32 %v13637_v51, %v13637_v51 }
 0xf23   :  { %v9966_v39 = vmul.f32 %v13639_v35, %v13639_v35 }
 0xf24   :  { %v9971_v37 = vsel %vm69_vm0, %v9967_v36, 0.0 }
 0xf25   :  { %9972 = vadd.xlane.f32.xlu0 %v9971_v37  ;;  %v9968_v38 = vsel %vm69_vm0, %v9966_v39, 0.0 }
 0xf26   :  { %9969 = vadd.xlane.f32.xlu1 %v9968_v38 }
 0xfb2   :  { %v9973_v13 = vpop.xlane.xlu0 %9972 }
 0xfb3   :  { %v9975_v14 = vmul.f32 0.03125, %v9973_v13  ;;  %v9970_v15 = vpop.xlane.xlu1 %9969 }
 0xfb4   :  { %v9974_v17 = vmul.f32 0.03125, %v9970_v15 }
 0xfb5   :  { %v9977_v18 = vadd.f32 1e-05, %v9975_v14 }
 0xfb6   :  { %v9976_v16 = vadd.f32 1e-05, %v9974_v17 }
 0xfb7   :  { %12952 = vrsqrt.f32 %v9977_v18 }
 0xfb8   :  { %12954 = vrsqrt.f32 %v9976_v16 }
 0xfc1   :  { %v12953_v19 = vpop.eup %12952 }
 0xfc2   :  { %v12955_v22 = vpop.eup %12954  ;;  %v9981_v23 = vmul.f32 %v12953_v19, %v13637_v51  ;;  %v10702_v19 = vsub.f32 %v10549_v52, %v10584_v54 }
 0xfc3   :  { %v9980_v24 = vmul.f32 %v12955_v22, %v13639_v35  ;;  %v10709_v22 = vsub.f32 %v10550_v53, %v10587_v55 }
 0xfc4   :  { %v9988_v26 = vmul.f32 %v11213_v20, %v9981_v23 }
 0xfc5   :  { %v9987_v27 = vmul.f32 %v11213_v20, %v9980_v24 }
 0xfc6   :  { %v13695_v28 = vadd.f32 %v11214_v25, %v9988_v26  ;;  %v10710_v26 = vand.u32 4294901760, %v10709_v22 }
 0xfc7   :  { %v13697_v30 = vadd.f32 %v11214_v25, %v9987_v27  ;;  %v10703_v25 = vand.u32 4294901760, %v10702_v19 }
 0xfc8   :  { %v10011_v21 = vsel %vm69_vm0, %v13695_v28, 0 }
 0xfc9   :  { %v10008_v31 = vsel %vm69_vm0, %v13697_v30, 0  ;;  %v10092_v32 = vand.u32 4294901760, %v10011_v21 }
 0xfca   :  { %v10082_v33 = vand.u32 4294901760, %v10008_v31 }
 0xfcb   :  { %v10093_v34 = vsub.f32 %v10011_v21, %v10092_v32  ;;  %v10704_v21 = vsub.f32 %v10702_v19, %v10703_v25 }
 0xfcc   :  { %v10083_v51 = vsub.f32 %v10008_v31, %v10082_v33  ;;  %v12633_v31 = vpack.c.bf16 %v10710_v26, %v10703_v25 }
 0xfcd   :  { %v10094_v35 = vand.u32 4294901760, %v10093_v34 }
 0xfce   :  { %v10084_v36 = vand.u32 4294901760, %v10083_v51 }
 0xfcf   :  { %v10095_v39 = vsub.f32 %v10093_v34, %v10094_v35 }
 0xfd0   :  { %v10085_v37 = vsub.f32 %v10083_v51, %v10084_v36 }
 0xfd1   :  { %v10096_v40 = vand.u32 4294901760, %v10095_v39 }
 0xfd2   :  { %v10086_v38 = vand.u32 4294901760, %v10085_v37  ;;  %v12601_v37 = vpack.c.bf16 %v10709_v22, %v10702_v19 }
 0xfd4   :  { %12289 = vmatprep.mubr.f32.mxu1 %v10086_v38  ;;  %v11215_v38 = vld [vmem:[%s13805_s7] ss:$0 sm:$0xff] }
 0xfd5   :  { %12290 = vmatmul.mubr.f32.vlgmr.msra.gmra.mrb[20].mxu1 %v10096_v40 }
 0xfd6   :  { %12520 = vmatpush3.bf16.msra.mxu1 %v12517_v63  ;;  %12300 = vmatprep.mubr.f32.mxu1 %v10082_v33  ;;  %v10669_v63 = vsub.f32 %v10667_v58, %v10668_v60 }
 0xfd7   :  { %12522 = vmatprep.subr.bf16.mxu1 %v12521_v4 }
 0xfd8   :  { %v10670_v3 = vand.u32 4294901760, %v10669_v63 }
 0xfda   :  { %12524 = vmatpush3.bf16.msra.mxu1 %v12521_v4  ;;  %v10675_v4 = vand.u32 4294901760, %v10674_v0 }
 0xfdb   :  { %12526 = vmatprep.subr.bf16.mxu1 %v12525_v5 }
 0xfdd   :  { %12301 = vmatmul.mubr.f32.vlgmr.msra.gmra.mrb[20].mxu1 %v10092_v32 }
 0xfde   :  { %12528 = vmatpush3.bf16.msra.mxu1 %v12525_v5  ;;  %12311 = vmatprep.mubr.f32.mxu1 %v10083_v51  ;;  %v10682_v5 = vand.u32 4294901760, %v10681_v1 }
 0xfdf   :  { %12530 = vmatprep.subr.bf16.mxu1 %v12529_v6 }
 0xfe0   :  { %v12625_v9 = vpack.c.bf16 %v10682_v5, %v10675_v4  ;;  %v10683_v10 = vsub.f32 %v10681_v1, %v10682_v5 }
 0xfe2   :  { %12532 = vmatpush3.bf16.msra.mxu1 %v12529_v6  ;;  %v12573_v6 = vpack.c.bf16 %v10670_v3, %v10663_v2  ;;  %v10684_v15 = vand.u32 4294901760, %v10683_v10 }
 0xfe3   :  { %12534 = vmatprep.subr.bf16.mxu1 %v13659_v47 }
 0xfe5   :  { %12312 = vmatmul.mubr.f32.vlgmr.msra.gmra.mrb[20].mxu1 %v10093_v34 }
 0xfe6   :  { %12536 = vmatpush3.bf16.msra.mxu1 %v13659_v47  ;;  %12322 = vmatprep.mubr.f32.mxu1 %v10084_v36  ;;  %v12593_v36 = vpack.c.bf16 %v10681_v1, %v10674_v0 }
 0xfe7   :  { %12538 = vmatprep.subr.bf16.mxu1 %v13661_v48 }
 0xfea   :  { %12540 = vmatpush3.bf16.msra.mxu1 %v13661_v48 }
 0xfeb   :  { %12542 = vmatprep.subr.bf16.mxu1 %v12541_v7 }
 0xfed   :  { %12323 = vmatmul.mubr.f32.vlgmr.msra.gmra.mrb[20].mxu1 %v10094_v35  ;;  %v12589_v35 = vpack.c.bf16 %v10667_v58, %v10660_v57 }
 0xfee   :  { %12544 = vmatpush3.bf16.msra.mxu1 %v12541_v7  ;;  %12333 = vmatprep.mubr.f32.mxu1 %v10082_v33  ;;  %v10676_v7 = vsub.f32 %v10674_v0, %v10675_v4 }
 0xfef   :  { %12546 = vmatprep.subr.bf16.mxu1 %v12545_v8 }
 0xff0   :  { %v10677_v11 = vand.u32 4294901760, %v10676_v7 }
 0xff2   :  { %12548 = vmatpush3.bf16.msra.mxu1 %v12545_v8  ;;  %v12577_v20 = vpack.c.bf16 %v10684_v15, %v10677_v11 }
 0xff3   :  { %12550 = vmatprep.subr.bf16.mxu1 %v13659_v47 }
 0xff5   :  { %12334 = vmatmul.mubr.f32.vlgmr.msra.gmra.mrb[20].mxu1 %v10092_v32 }
 0xff6   :  { %12552 = vmatpush3.bf16.msra.mxu1 %v13659_v47  ;;  %12344 = vmatprep.mubr.f32.mxu1 %v10082_v33  ;;  %v10578_v47 = vand.u32 4294901760, %v10547_v50  ;;  %v10705_v33 = vand.u32 4294901760, %v10704_v21 }
 0xff7   :  { %12554 = vmatprep.subr.bf16.mxu1 %v13661_v48 }
 0xff8   :  { %v10688_v8 = vsub.f32 %v10547_v50, %v10578_v47 }
 0xffa   :  { %12556 = vmatpush3.bf16.msra.mxu1 %v13661_v48  ;;  %v10581_v48 = vand.u32 4294901760, %v10548_v45  ;;  %v10689_v13 = vand.u32 4294901760, %v10688_v8 }
 0xffb   :  { %12558 = vmatprep.subr.bf16.mxu1 %v13683_v12 }
 0xffc   :  { %v13731_v49 = vpack.c.bf16 %v10581_v48, %v10578_v47  ;;  %v10695_v46 = vsub.f32 %v10548_v45, %v10581_v48  ;;  %v10690_v18 = vsub.f32 %v10688_v8, %v10689_v13 }
 0xffd   :  { %12345 = vmatmul.mubr.f32.vlgmr.msra.gmra.mrb[20].mxu1 %v10092_v32  ;;  %v10711_v32 = vsub.f32 %v10709_v22, %v10710_v26 }
 0xffe   :  { %12560 = vmatpush3.bf16.msra.mxu1 %v13683_v12  ;;  %12614 = vmatprep.subr.bf16.mxu0 %v13731_v49  ;;  %v10696_v14 = vand.u32 4294901760, %v10695_v46  ;;  %v10691_v23 = vand.u32 4294901760, %v10690_v18  ;;  %v12597_v39 = vpack.c.bf16 %v10695_v46, %v10688_v8 }
 0xfff   :  { %12562 = vmatprep.subr.bf16.mxu1 %v13719_v44  ;;  %12616 = vmatpush3.bf16.msra.mxu0 %v13731_v49  ;;  %v10712_v34 = vand.u32 4294901760, %v10711_v32 }
0x1000   :  { %12618 = vmatprep.subr.bf16.mxu0 %v13743_v56  ;;  %v12629_v17 = vpack.c.bf16 %v10696_v14, %v10689_v13  ;;  %v10697_v16 = vsub.f32 %v10695_v46, %v10696_v14 }
0x1001   :  { %v12585_v51 = vpack.c.bf16 %v10712_v34, %v10705_v33 }
0x1002   :  { %12564 = vmatpush3.bf16.msra.mxu1 %v13719_v44  ;;  %v10698_v24 = vand.u32 4294901760, %v10697_v16 }
0x1003   :  { %12566 = vmatprep.subr.bf16.mxu1 %v13731_v49  ;;  %12620 = vmatpush3.bf16.msra.mxu0 %v13743_v56 }
0x1004   :  { %12622 = vmatprep.subr.bf16.mxu0 %v12621_v61  ;;  %v12581_v27 = vpack.c.bf16 %v10698_v24, %v10691_v23  ;;  %v11217_v23 = vld [vmem:[%s13808_s10 + $0x1] ss:$0 sm:$0xff] }
0x1006   :  { %12568 = vmatpush3.bf16.msra.mxu1 %v13731_v49 }
0x1007   :  { %12570 = vmatprep.subr.bf16.mxu1 %v13743_v56 }
0x100a   :  { %12572 = vmatpush3.bf16.msra.mxu1 %v13743_v56 }
0x100b   :  { %12574 = vmatprep.subr.bf16.mxu1 %v12573_v6 }
0x10d0   :  { %v12346_v40 = vpop.f32.mrb[20].mxu1 }
0x10d1   :  { %v12663_v41 = vadd.f32 %v12346_v40, %v11215_v38  ;;  %v10531_v29 = vpop.f32.mrb[21].mxu1 }
0x10d2   :  { %v12664_v42 = vadd.f32 %v11215_v38, %v10531_v29 }
0x10d3   :  { %v10542_v43 = vmax.f32 %v12663_v41, 0.0 }
0x10d4   :  { %v10541_v50 = vmax.f32 %v12664_v42, 0.0 }
0x10d5   :  { %v10563_v45 = vsel %vm10558_vm3, %v10542_v43, 0 }
0x10d6   :  { %v10648_v47 = vand.u32 4294901760, %v10563_v45  ;;  %v10560_v48 = vsel %vm10558_vm3, %v10541_v50, 0 }
0x10d7   :  { %v10638_v52 = vand.u32 4294901760, %v10560_v48 }
0x10d8   :  { %v10649_v53 = vsub.f32 %v10563_v45, %v10648_v47 }
0x10d9   :  { %v10639_v54 = vsub.f32 %v10560_v48, %v10638_v52 }
0x10da   :  { %v10650_v55 = vand.u32 4294901760, %v10649_v53 }
0x10db   :  { %v10640_v57 = vand.u32 4294901760, %v10639_v54 }
0x10dc   :  { %v10651_v58 = vsub.f32 %v10649_v53, %v10650_v55 }
0x10dd   :  { %12420 = vmatprep.mubr.f32.mxu0 %v10640_v57  ;;  %v10641_v59 = vsub.f32 %v10639_v54, %v10640_v57 }
0x10de   :  { %12421 = vmatmul.mubr.f32.vlgmr.msra.gmra.mrb[16].mxu0 %v10650_v55  ;;  %v10652_v62 = vand.u32 4294901760, %v10651_v58 }
0x10df   :  { %12624 = vmatpush3.bf16.msra.mxu0 %v12621_v61  ;;  %12439 = vmatprep.mubr.f32.mxu0 %v10638_v52  ;;  %v10642_v60 = vand.u32 4294901760, %v10641_v59 }
0x10e0   :  { %12626 = vmatprep.subr.bf16.mxu0 %v12625_v9 }
0x10e1   :  { %12363 = vmatprep.mubr.f32.mxu1 %v10642_v60 }
0x10e2   :  { %12364 = vmatmul.mubr.f32.vlgmr.msra.gmra.mrb[22].mxu1 %v10652_v62 }
0x10e3   :  { %12576 = vmatpush3.bf16.msra.mxu1 %v12573_v6  ;;  %12628 = vmatpush3.bf16.msra.mxu0 %v12625_v9 }
0x10e4   :  { %12382 = vmatprep.mubr.f32.mxu1 %v10638_v52  ;;  %12578 = vmatprep.subr.bf16.mxu1 %v12577_v20 }
0x10e5   :  { %12630 = vmatprep.subr.bf16.mxu0 %v12629_v17 }
0x10e7   :  { %12580 = vmatpush3.bf16.msra.mxu1 %v12577_v20  ;;  %12632 = vmatpush3.bf16.msra.mxu0 %v12629_v17 }
0x10e8   :  { %12582 = vmatprep.subr.bf16.mxu1 %v12581_v27  ;;  %12634 = vmatprep.subr.bf16.mxu0 %v12633_v31 }
0x10eb   :  { %12584 = vmatpush3.bf16.msra.mxu1 %v12581_v27  ;;  %12636 = vmatpush3.bf16.msra.mxu0 %v12633_v31  ;;  %v11218_v27 = vld [vmem:[%s13809_s11 + $0x1] ss:$0 sm:$0xff] }
0x10ec   :  { %12586 = vmatprep.subr.bf16.mxu1 %v12585_v51  ;;  %12638 = vmatprep.subr.bf16.mxu0 %v13683_v12 }
0x10ee   :  { %12440 = vmatmul.mubr.f32.vlgmr.msra.gmra.mrb[16].mxu0 %v10648_v47 }
0x10ef   :  { %12588 = vmatpush3.bf16.msra.mxu1 %v12585_v51  ;;  %12640 = vmatpush3.bf16.msra.mxu0 %v13683_v12 }
0x10f0   :  { %12458 = vmatprep.mubr.f32.mxu0 %v10638_v52  ;;  %12590 = vmatprep.subr.bf16.mxu1 %v12589_v35 }
0x10f1   :  { %12642 = vmatprep.subr.bf16.mxu0 %v13719_v44 }
0x10f2   :  { %12383 = vmatmul.mubr.f32.vlgmr.msra.gmra.mrb[22].mxu1 %v10648_v47 }
0x10f3   :  { %12592 = vmatpush3.bf16.msra.mxu1 %v12589_v35  ;;  %12401 = vmatprep.mubr.f32.mxu1 %v10639_v54 }
0x10f4   :  { %12644 = vmatpush3.bf16.msra.mxu0 %v13719_v44  ;;  %12594 = vmatprep.subr.bf16.mxu1 %v12593_v36  ;;  %v11216_v44 = vld [vmem:[%s13807_s9] ss:$0 sm:$0xff] }
0x10f5   :  { %12646 = vmatprep.subr.bf16.mxu0 %v13731_v49 }
0x10f7   :  { %12596 = vmatpush3.bf16.msra.mxu1 %v12593_v36 }
0x10f8   :  { %12648 = vmatpush3.bf16.msra.mxu0 %v13731_v49  ;;  %12598 = vmatprep.subr.bf16.mxu1 %v12597_v39 }
0x10f9   :  { %12650 = vmatprep.subr.bf16.mxu0 %v13743_v56 }
0x10fb   :  { %12600 = vmatpush3.bf16.msra.mxu1 %v12597_v39 }
0x10fc   :  { %12652 = vmatpush3.bf16.msra.mxu0 %v13743_v56  ;;  %12602 = vmatprep.subr.bf16.mxu1 %v12601_v37 }
0x10ff   :  { %12459 = vmatmul.mubr.f32.vlgmr.msra.gmra.mrb[16].mxu0 %v10648_v47  ;;  %12604 = vmatpush3.bf16.msra.mxu1 %v12601_v37 }
0x1102   :  { %12402 = vmatmul.mubr.f32.vlgmr.msra.gmra.mrb[22].mxu1 %v10649_v53 }
0x11d2   :  { %v12460_v12 = vpop.f32.mrb[16].mxu0 }
0x11d3   :  { %v11135_v61 = vpop.f32.mrb[17].mxu0 }
0x11d5   :  { %v12403_v63 = vpop.f32.mrb[22].mxu1 }
0x11d6   :  { %v12665_v0 = vadd.f32 %v12403_v63, %v11216_v44  ;;  %v10859_v1 = vpop.f32.mrb[23].mxu1 }
0x11d7   :  { %v12667_v49 = vadd.f32 %v11216_v44, %v10859_v1 }
0x11d8   :  { %v12666_v2 = vadd.f32 %v12665_v0, %v12460_v12 }
0x11d9   :  { %v12668_v3 = vadd.f32 %v12667_v49, %v11135_v61 }
0x11da   :  { %v11146_v4 = vadd.f32 %v12666_v2, %v13695_v28 }
0x11db   :  { %v11145_v56 = vadd.f32 %v12668_v3, %v13697_v30 }
0x11dc   :  { %v11150_v5 = vsel %vm69_vm0, %v11146_v4, 0.0 }
0x11dd   :  { %11151 = vadd.xlane.f32.xlu0 %v11150_v5  ;;  %v11147_v6 = vsel %vm69_vm0, %v11145_v56, 0.0 }
0x11de   :  { %11148 = vadd.xlane.f32.xlu1 %v11147_v6 }
0x126a   :  { %v11152_v7 = vpop.xlane.xlu0 %11151 }
0x126b   :  { %v11154_v8 = vmul.f32 0.03125, %v11152_v7  ;;  %v11149_v46 = vpop.xlane.xlu1 %11148 }
0x126c   :  { %v11153_v9 = vmul.f32 0.03125, %v11149_v46 }
0x126d   :  { %v11156_v10 = vsub.f32 %v11146_v4, %v11154_v8 }
0x126e   :  { %v11155_v11 = vsub.f32 %v11145_v56, %v11153_v9 }
0x126f   :  { %v11158_v13 = vmul.f32 %v11156_v10, %v11156_v10 }
0x1270   :  { %v11157_v14 = vmul.f32 %v11155_v11, %v11155_v11 }
0x1271   :  { %v11162_v15 = vsel %vm69_vm0, %v11158_v13, 0.0 }
0x1272   :  { %11163 = vadd.xlane.f32.xlu0 %v11162_v15  ;;  %v11159_v28 = vsel %vm69_vm0, %v11157_v14, 0.0 }
0x1273   :  { %11160 = vadd.xlane.f32.xlu1 %v11159_v28 }
0x12ff   :  { %v11164_v30 = vpop.xlane.xlu0 %11163 }
0x1300   :  { %v11166_v17 = vmul.f32 0.03125, %v11164_v30  ;;  %v11161_v18 = vpop.xlane.xlu1 %11160 }
0x1301   :  { %v11165_v16 = vmul.f32 0.03125, %v11161_v18 }
0x1302   :  { %v11168_v19 = vadd.f32 1e-05, %v11166_v17 }
0x1303   :  { %v11167_v20 = vadd.f32 1e-05, %v11165_v16 }
0x1304   :  { %12956 = vrsqrt.f32 %v11168_v19 }
0x1305   :  { %12958 = vrsqrt.f32 %v11167_v20 }
0x130e   :  { %v12957_v22 = vpop.eup %12956 }
0x130f   :  { %v12959_v24 = vpop.eup %12958  ;;  %v11172_v25 = vmul.f32 %v12957_v22, %v11156_v10 }
0x1310   :  { %v11171_v26 = vmul.f32 %v12959_v24, %v11155_v11 }
0x1311   :  { %v11179_v21 = vmul.f32 %v11217_v23, %v11172_v25 }
0x1312   :  { %v11178_v31 = vmul.f32 %v11217_v23, %v11171_v26 }
0x1313   :  { %v11186_v32 = vadd.f32 %v11218_v27, %v11179_v21 }
0x1314   :  { %v11185_v33 = vadd.f32 %v11218_v27, %v11178_v31 }
0x1315   :  { %11188 = vst.msk [vmem:[#allocation5 + $0x8] sm:$0xff] %vm69_vm0, %v11186_v32 }
0x1316   :  { %11187 = vst.msk [vmem:[#allocation5] sm:$0xff] %vm69_vm0, %v11185_v33 }
0x1317   :  { %12997 = shalt.err (!%p12994_p12)
}
0x1318   :  { %s12998_s22 = scalar_lea.hbm %s13810_s12, 256 }
0x1319   :  { %p12999_p13 = scmp.ne.s32.totalorder %s13810_s12, %s12998_s22  ;;  %p13002_p0 = scmp.lt.u32.totalorder %s12998_s22, %s13810_s12 }
0x131b   :  { %p13004_p1 = pnand %p13002_p0, %p12999_p13 }
0x131d   :  { %13007 = shalt.err (!%p13004_p1)
}
0x131e   :  { %11200 = dma.vmem_to_hbm [thread:$0]  %s11195_s0, 256, %s13810_s12, [#allocation4], %s13013_s13, %s13013_s13, %s13014_s14  }
0x131f   :  { %13010 = dma.done.wait [#allocation4], 256  }
0x1320   :  { %13011 = vsyncadd [#allocation4], 4294967040 }
0x1321   :  { %11204 = vsyncpa [#allocation3], 1 }
0x1322   :  { %11205 = vsyncpa [#allocation4], 1 }

</bundles_post_ra>
